<compile_context>
chip_gen: v7x
topology: tpu7x:2x2x1
jax: 0.10.0
libtpu: 0.0.40
codegen_flags: <defaults>
</compile_context>

<pallas_src>
import functools

import jax
import jax.numpy as jnp
from jax.experimental import pallas as pl
from jax.experimental.pallas import tpu as pltpu


# ----------------------------------------------------------------------------
# In-kernel helpers
# ----------------------------------------------------------------------------
def _layernorm(x, g, b, eps=1e-5):
    # one-pass: issue sum and sum-of-squares reductions together
    mean = jnp.mean(x, axis=-1, keepdims=True)
    mean_sq = jnp.mean(x * x, axis=-1, keepdims=True)
    var = mean_sq - mean * mean
    return (x - mean) * jax.lax.rsqrt(var + eps) * g + b


def _choose_batch_tile(B, L, target_m=256):
    """Pick Bt so M = Bt*L ~ MXU width, while keeping >=2 parallel grid steps."""
    bt = max(1, min(B, -(-target_m // L)))          # ceil(target_m / L), capped at B
    while bt > 1 and (B % bt != 0 or B // bt < 2):
        bt -= 1
    if B % bt != 0:
        bt = 1
    return bt


# ----------------------------------------------------------------------------
# Fully fused CLIP transformer stack (ONE pallas_call for all layers)
# ----------------------------------------------------------------------------
def _transformer_kernel(x_ref, pos_ref, ln1_g_ref, ln1_b_ref, wqkv_ref, bqkv_ref,
                        wo_ref, bo_ref, ln2_g_ref, ln2_b_ref, w1_ref, b1_ref,
                        w2_ref, b2_ref, o_ref, attn_scratch, *, heads, Bt, L, D):
    dh = D // heads
    layer = pl.program_id(1)

    # depth==0: seed the resident residual stream (o_ref block index is constant
    # along the depth grid axis, so it stays in VMEM across all layers) with
    # texts + positional embedding (positional add fused here).
    @pl.when(layer == 0)
    def _():
        o_ref[...] = (x_ref[...].astype(jnp.float32)
                      + pos_ref[...].astype(jnp.float32)[None])

    x = o_ref[...].reshape(Bt * L, D)                       # (M, D) f32 residual

    # -------- attention branch (pre-LN) --------
    h = _layernorm(x, ln1_g_ref[...], ln1_b_ref[...])
    qkv = jnp.dot(h.astype(jnp.bfloat16), wqkv_ref[...],
                  preferred_element_type=jnp.float32) + bqkv_ref[...]   # (M, 3D)

    # causal mask built once, shared across heads / batch rows
    row = jax.lax.broadcasted_iota(jnp.int32, (L, L), 0)
    col = jax.lax.broadcasted_iota(jnp.int32, (L, L), 1)
    neg = jnp.where(col <= row, 0.0, -1e30).astype(jnp.float32)

    wo = wo_ref[...]                                        # (D, D) bf16
    for bt in range(Bt):                                    # static unroll (rows)
        qkv_b = qkv[bt * L:(bt + 1) * L, :]                 # (L, 3D)
        acc = jnp.zeros((L, D), jnp.float32)
        for hd in range(heads):                             # head -> out_proj accum
            q = qkv_b[:, hd * dh:(hd + 1) * dh]             # 1/sqrt(dh) folded in W_q
            k = qkv_b[:, D + hd * dh:D + (hd + 1) * dh]
            v = qkv_b[:, 2 * D + hd * dh:2 * D + (hd + 1) * dh]
            s = jnp.dot(q.astype(jnp.bfloat16), k.astype(jnp.bfloat16).T,
                        preferred_element_type=jnp.float32) + neg       # (L, L)
            s = s - jnp.max(s, axis=-1, keepdims=True)
            p = jnp.exp(s)
            p = p * pl.reciprocal(jnp.sum(p, axis=-1, keepdims=True), approx=True)
            ho = jnp.dot(p.astype(jnp.bfloat16), v.astype(jnp.bfloat16),
                         preferred_element_type=jnp.float32)            # (L, dh)
            acc = acc + jnp.dot(ho.astype(jnp.bfloat16),
                                wo[hd * dh:(hd + 1) * dh, :],
                                preferred_element_type=jnp.float32)     # (L, D)
        attn_scratch[bt] = acc

    x = x + attn_scratch[...].reshape(Bt * L, D) + bo_ref[...]          # residual 1

    # -------- MLP branch (pre-LN); (M, 4D) intermediate never leaves VMEM ----
    h2 = _layernorm(x, ln2_g_ref[...], ln2_b_ref[...])
    hid = jnp.dot(h2.astype(jnp.bfloat16), w1_ref[...],
                  preferred_element_type=jnp.float32) + b1_ref[...]
    hid = hid * jax.nn.sigmoid(1.702 * hid)                 # QuickGELU
    mlp = jnp.dot(hid.astype(jnp.bfloat16), w2_ref[...],
                  preferred_element_type=jnp.float32) + b2_ref[...]
    o_ref[...] = (x + mlp).reshape(Bt, L, D)                # residual 2 (resident)


def transformer_stack(x, params):
    B, L, D = x.shape
    depth = params["in_proj_w"].shape[0]
    heads = params["heads"]
    Bt = _choose_batch_tile(B, L)

    per_layer = lambda b, l: (l, 0, 0)
    kernel = functools.partial(_transformer_kernel, heads=heads, Bt=Bt, L=L, D=D)
    return pl.pallas_call(
        kernel,
        out_shape=jax.ShapeDtypeStruct((B, L, D), jnp.float32),
        grid=(B // Bt, depth),
        in_specs=[
            pl.BlockSpec((Bt, L, D), lambda b, l: (b, 0, 0)),   # x (read at l==0)
            pl.BlockSpec((L, D), lambda b, l: (0, 0)),          # pos_emb (resident)
            pl.BlockSpec((None, 1, D), per_layer),              # ln1 gamma
            pl.BlockSpec((None, 1, D), per_layer),              # ln1 beta
            pl.BlockSpec((None, D, 3 * D), per_layer),          # in_proj W
            pl.BlockSpec((None, 1, 3 * D), per_layer),          # in_proj b
            pl.BlockSpec((None, D, D), per_layer),              # out_proj W
            pl.BlockSpec((None, 1, D), per_layer),              # out_proj b
            pl.BlockSpec((None, 1, D), per_layer),              # ln2 gamma
            pl.BlockSpec((None, 1, D), per_layer),              # ln2 beta
            pl.BlockSpec((None, D, 4 * D), per_layer),          # fc1 W
            pl.BlockSpec((None, 1, 4 * D), per_layer),          # fc1 b
            pl.BlockSpec((None, 4 * D, D), per_layer),          # fc2 W
            pl.BlockSpec((None, 1, D), per_layer),              # fc2 b
        ],
        out_specs=pl.BlockSpec((Bt, L, D), lambda b, l: (b, 0, 0)),
        scratch_shapes=[pltpu.VMEM((Bt, L, D), jnp.float32)],   # attn per-row slabs
        compiler_params=pltpu.CompilerParams(
            dimension_semantics=("parallel", "arbitrary"),      # batch x depth
            vmem_limit_bytes=48 * 1024 * 1024,                  # safe on v7x (64 MiB)
        ),
    )(x, params["pos_emb"], params["ln1_g"], params["ln1_b"],
      params["in_proj_w"], params["in_proj_b"],
      params["out_proj_w"], params["out_proj_b"],
      params["ln2_g"], params["ln2_b"],
      params["fc1_w"], params["fc1_b"], params["fc2_w"], params["fc2_b"])


# ----------------------------------------------------------------------------
# Fused ln_final (on pooled rows only) + text projection
# ----------------------------------------------------------------------------
def _pool_proj_kernel(x_ref, g_ref, b_ref, w_ref, o_ref):
    y = _layernorm(x_ref[...].astype(jnp.float32), g_ref[...], b_ref[...])
    o_ref[...] = jnp.dot(y.astype(jnp.bfloat16), w_ref[...],
                         preferred_element_type=jnp.float32).astype(o_ref.dtype)


def pooled_ln_project(pooled, g, b, proj):
    B, D = pooled.shape
    E = proj.shape[1]
    return pl.pallas_call(
        _pool_proj_kernel,
        out_shape=jax.ShapeDtypeStruct((B, E), jnp.float32),
        grid=(1,),
        in_specs=[
            pl.BlockSpec((B, D), lambda i: (0, 0)),
            pl.BlockSpec((1, D), lambda i: (0, 0)),
            pl.BlockSpec((1, D), lambda i: (0, 0)),
            pl.BlockSpec((D, E), lambda i: (0, 0)),
        ],
        out_specs=pl.BlockSpec((B, E), lambda i: (0, 0)),
    )(pooled, g, b, proj)


# ----------------------------------------------------------------------------
# Forward pass (glue in plain JAX, hot path in one fused Pallas kernel)
# ----------------------------------------------------------------------------
def text_encoder_forward(params, texts, tokenized_prompts, JP_prompts, BL_prompts,
                         compound_prompts_text, texts_JP, texts_BL):
    B = texts.shape[0]

    # TODO(synk): the custom MaPLe-style transformer (model.text_encoder.transformer)
    # also runs x1/x2 branches (texts_JP / texts_BL) with per-layer JP_prompts /
    # BL_prompts / compound_prompts_text injection; its internals are not given and
    # only outputs[0] (the x branch) is consumed downstream, so we run a standard
    # CLIP residual-attention stack on x and skip the dead x1/x2 work entirely.
    x = transformer_stack(texts, params)                    # pos add fused at layer 0

    # Pool at EOT (argmax over token ids).  LayerNorm is per-row, so applying
    # ln_final only to the pooled rows is mathematically identical to the
    # reference LN-then-gather.  The B-row gather itself is tiny JAX glue.
    eot = jnp.argmax(tokenized_prompts, axis=-1)            # (B,)
    pooled = x[jnp.arange(B), eot]                          # (B, D)
    return pooled_ln_project(pooled, params["ln_final_g"], params["ln_final_b"],
                             params["text_projection"])     # (B, embed_dim)


# ----------------------------------------------------------------------------
# Deterministic synthetic parameters (weights bf16, norms/biases f32), stacked
# along a leading depth axis so the fused kernel can index layers by grid coord.
# ----------------------------------------------------------------------------
def init_params(key, *, depth, width, heads, embed_dim, ctx_len):
    D = width
    dh = D // heads
    scale = dh ** -0.5
    k_pos, k_proj, k_w = jax.random.split(key, 3)

    in_w, out_w, fc1_w, fc2_w = [], [], [], []
    for i in range(depth):
        lk = jax.random.split(jax.random.fold_in(k_w, i), 4)
        # weights stored as (in, out) so kernels compute x @ W directly;
        # in_proj packs [q|k|v] along the output dim (head-major within each).
        w_qkv = 0.02 * jax.random.normal(lk[0], (D, 3 * D), jnp.float32)
        # fold 1/sqrt(dh) into the q columns (bias is zero; real checkpoints
        # must also scale the q bias).
        w_qkv = w_qkv.at[:, :D].multiply(scale)
        in_w.append(w_qkv.astype(jnp.bfloat16))
        out_w.append((0.02 * jax.random.normal(lk[1], (D, D),
                                               jnp.float32)).astype(jnp.bfloat16))
        fc1_w.append((0.02 * jax.random.normal(lk[2], (D, 4 * D),
                                               jnp.float32)).astype(jnp.bfloat16))
        fc2_w.append((0.02 * jax.random.normal(lk[3], (4 * D, D),
                                               jnp.float32)).astype(jnp.bfloat16))

    return {
        "heads": heads,
        "pos_emb": 0.02 * jax.random.normal(k_pos, (ctx_len, D), jnp.float32),
        "ln1_g": jnp.ones((depth, 1, D), jnp.float32),
        "ln1_b": jnp.zeros((depth, 1, D), jnp.float32),
        "in_proj_w": jnp.stack(in_w),                       # (depth, D, 3D) bf16
        "in_proj_b": jnp.zeros((depth, 1, 3 * D), jnp.float32),
        "out_proj_w": jnp.stack(out_w),                     # (depth, D, D) bf16
        "out_proj_b": jnp.zeros((depth, 1, D), jnp.float32),
        "ln2_g": jnp.ones((depth, 1, D), jnp.float32),
        "ln2_b": jnp.zeros((depth, 1, D), jnp.float32),
        "fc1_w": jnp.stack(fc1_w),                          # (depth, D, 4D) bf16
        "fc1_b": jnp.zeros((depth, 1, 4 * D), jnp.float32),
        "fc2_w": jnp.stack(fc2_w),                          # (depth, 4D, D) bf16
        "fc2_b": jnp.zeros((depth, 1, D), jnp.float32),
        "ln_final_g": jnp.ones((1, D), jnp.float32),
        "ln_final_b": jnp.zeros((1, D), jnp.float32),
        "text_projection": (0.02 * jax.random.normal(k_proj, (D, embed_dim),
                                                     jnp.float32)).astype(jnp.bfloat16),
    }


# ----------------------------------------------------------------------------
if __name__ == "__main__":
    B, L, D, H, depth, E = 2, 8, 32, 4, 2, 16

    key = jax.random.PRNGKey(0)
    k_tex, k_jp, k_bl, k_pr, k_par = jax.random.split(key, 5)

    params = init_params(k_par, depth=depth, width=D, heads=H,
                         embed_dim=E, ctx_len=L)

    texts = 0.02 * jax.random.normal(k_tex, (B, L, D), jnp.float32)
    texts_JP = 0.02 * jax.random.normal(k_jp, (B, L, D), jnp.float32)
    texts_BL = 0.02 * jax.random.normal(k_bl, (B, L, D), jnp.float32)
    JP_prompts = 0.02 * jax.random.normal(k_pr, (4, D), jnp.float32)
    BL_prompts = JP_prompts
    compound_prompts_text = [
        0.02 * jax.random.normal(jax.random.PRNGKey(10 + i), (4, D), jnp.float32)
        for i in range(depth - 1)
    ]
    # token ids; argmax(-1) picks the EOT position (largest id)
    tokenized_prompts = jnp.array(
        [[1, 5, 7, 9, 49406, 0, 0, 0],
         [1, 3, 49406, 0, 0, 0, 0, 0]], dtype=jnp.int32)

    fwd = jax.jit(functools.partial(text_encoder_forward, params))
    out = fwd(texts, tokenized_prompts, JP_prompts, BL_prompts,
              compound_prompts_text, texts_JP, texts_BL)
    out = jax.block_until_ready(out)

    assert out.shape == (B, E) and out.dtype == jnp.float32
    print("KERNEL_OK")
</pallas_src>

<mosaic_0001>
module attributes {stable_mosaic.version = 11 : i64} {
  func.func @_transformer_kernel(%arg0: i32, %arg1: i32, %arg2: memref<1x8x32xf32, #tpu.memory_space<vmem>>, %arg3: memref<8x32xf32, #tpu.memory_space<vmem>>, %arg4: memref<1x1x32xf32, #tpu.memory_space<vmem>>, %arg5: memref<1x1x32xf32, #tpu.memory_space<vmem>>, %arg6: memref<1x32x96xbf16, #tpu.memory_space<vmem>>, %arg7: memref<1x1x96xf32, #tpu.memory_space<vmem>>, %arg8: memref<1x32x32xbf16, #tpu.memory_space<vmem>>, %arg9: memref<1x1x32xf32, #tpu.memory_space<vmem>>, %arg10: memref<1x1x32xf32, #tpu.memory_space<vmem>>, %arg11: memref<1x1x32xf32, #tpu.memory_space<vmem>>, %arg12: memref<1x32x128xbf16, #tpu.memory_space<vmem>>, %arg13: memref<1x1x128xf32, #tpu.memory_space<vmem>>, %arg14: memref<1x128x32xbf16, #tpu.memory_space<vmem>>, %arg15: memref<1x1x32xf32, #tpu.memory_space<vmem>>, %arg16: memref<1x8x32xf32, #tpu.memory_space<vmem>>, %arg17: memref<1x8x32xf32, #tpu.memory_space<vmem>>) attributes {dimension_semantics = [#tpu.dimension_semantics<parallel>, #tpu.dimension_semantics<arbitrary>], iteration_bounds = array<i64: 2, 2>, scalar_prefetch = 0 : i64, scratch_operands = 1 : i64, tpu.core_type = #tpu.core_type<tc>, window_params = [{transform_indices = @transform_0, window_bounds = array<i64: 1, 8, 32>}, {pipeline_mode = #tpu.pipeline_mode<synchronous>, transform_indices = @transform_1, window_bounds = array<i64: 8, 32>}, {transform_indices = @transform_2, window_bounds = array<i64: 1, 1, 32>}, {transform_indices = @transform_3, window_bounds = array<i64: 1, 1, 32>}, {transform_indices = @transform_4, window_bounds = array<i64: 1, 32, 96>}, {transform_indices = @transform_5, window_bounds = array<i64: 1, 1, 96>}, {transform_indices = @transform_6, window_bounds = array<i64: 1, 32, 32>}, {transform_indices = @transform_7, window_bounds = array<i64: 1, 1, 32>}, {transform_indices = @transform_8, window_bounds = array<i64: 1, 1, 32>}, {transform_indices = @transform_9, window_bounds = array<i64: 1, 1, 32>}, {transform_indices = @transform_10, window_bounds = array<i64: 1, 32, 128>}, {transform_indices = @transform_11, window_bounds = array<i64: 1, 1, 128>}, {transform_indices = @transform_12, window_bounds = array<i64: 1, 128, 32>}, {transform_indices = @transform_13, window_bounds = array<i64: 1, 1, 32>}, {transform_indices = @transform_14, window_bounds = array<i64: 1, 8, 32>}]} {
    %c0_i32 = arith.constant 0 : i32
    %0 = arith.cmpi eq, %arg1, %c0_i32 : i32
    %1 = arith.extui %0 : i1 to i32
    %c0_i32_0 = arith.constant 0 : i32
    %2 = arith.cmpi ne, %1, %c0_i32_0 : i32
    scf.if %2 {
      %c0_85 = arith.constant 0 : index
      %c0_86 = arith.constant 0 : index
      %c0_87 = arith.constant 0 : index
      %211 = vector.load %arg2[%c0_85, %c0_86, %c0_87] : memref<1x8x32xf32, #tpu.memory_space<vmem>>, vector<1x8x32xf32>
      %c0_88 = arith.constant 0 : index
      %c0_89 = arith.constant 0 : index
      %212 = vector.load %arg3[%c0_88, %c0_89] : memref<8x32xf32, #tpu.memory_space<vmem>>, vector<8x32xf32>
      %213 = vector.shape_cast %212 : vector<8x32xf32> to vector<1x8x32xf32>
      %214 = arith.addf %211, %213 : vector<1x8x32xf32>
      %c0_90 = arith.constant 0 : index
      %c0_91 = arith.constant 0 : index
      %c0_92 = arith.constant 0 : index
      %215 = vector.load %arg16[%c0_90, %c0_91, %c0_92] : memref<1x8x32xf32, #tpu.memory_space<vmem>>, vector<1x8x32xf32>
      tpu.vector_store %arg16[%c0_90, %c0_91, %c0_92], %214 {strides = array<i32>} : memref<1x8x32xf32, #tpu.memory_space<vmem>>, vector<1x8x32xf32>,
    } else {
    }
    %c0 = arith.constant 0 : index
    %c0_1 = arith.constant 0 : index
    %c0_2 = arith.constant 0 : index
    %3 = vector.load %arg16[%c0, %c0_1, %c0_2] : memref<1x8x32xf32, #tpu.memory_space<vmem>>, vector<1x8x32xf32>
    %4 = vector.shape_cast %3 : vector<1x8x32xf32> to vector<8x32xf32>
    %c0_3 = arith.constant 0 : index
    %c0_4 = arith.constant 0 : index
    %c0_5 = arith.constant 0 : index
    %5 = vector.load %arg4[%c0_3, %c0_4, %c0_5] : memref<1x1x32xf32, #tpu.memory_space<vmem>>, vector<1x1x32xf32>
    %6 = vector.shape_cast %5 : vector<1x1x32xf32> to vector<1x32xf32>
    %c0_6 = arith.constant 0 : index
    %c0_7 = arith.constant 0 : index
    %c0_8 = arith.constant 0 : index
    %7 = vector.load %arg5[%c0_6, %c0_7, %c0_8] : memref<1x1x32xf32, #tpu.memory_space<vmem>>, vector<1x1x32xf32>
    %8 = vector.shape_cast %7 : vector<1x1x32xf32> to vector<1x32xf32>
    %cst = arith.constant dense<0.000000e+00> : vector<8xf32>
    %9 = vector.multi_reduction <add>, %4, %cst [1] : vector<8x32xf32> to vector<8xf32>
    %10 = vector.shape_cast %9 : vector<8xf32> to vector<8x1xf32>
    %cst_9 = arith.constant 3.200000e+01 : f32
    %11 = vector.broadcast %cst_9 : f32 to vector<8x1xf32>
    %12 = arith.divf %10, %11 : vector<8x1xf32>
    %13 = arith.mulf %4, %4 : vector<8x32xf32>
    %cst_10 = arith.constant dense<0.000000e+00> : vector<8xf32>
    %14 = vector.multi_reduction <add>, %13, %cst_10 [1] : vector<8x32xf32> to vector<8xf32>
    %15 = vector.shape_cast %14 : vector<8xf32> to vector<8x1xf32>
    %cst_11 = arith.constant 3.200000e+01 : f32
    %16 = vector.broadcast %cst_11 : f32 to vector<8x1xf32>
    %17 = arith.divf %15, %16 : vector<8x1xf32>
    %18 = arith.mulf %12, %12 : vector<8x1xf32>
    %19 = arith.subf %17, %18 : vector<8x1xf32>
    %20 = vector.broadcast %12 : vector<8x1xf32> to vector<8x32xf32>
    %21 = arith.subf %4, %20 : vector<8x32xf32>
    %cst_12 = arith.constant 9.99999974E-6 : f32
    %22 = vector.broadcast %cst_12 : f32 to vector<8x1xf32>
    %23 = arith.addf %19, %22 : vector<8x1xf32>
    %24 = math.rsqrt %23 : vector<8x1xf32>
    %25 = vector.broadcast %24 : vector<8x1xf32> to vector<8x32xf32>
    %26 = arith.mulf %21, %25 : vector<8x32xf32>
    %27 = vector.broadcast %6 : vector<1x32xf32> to vector<8x32xf32>
    %28 = arith.mulf %26, %27 : vector<8x32xf32>
    %29 = vector.broadcast %8 : vector<1x32xf32> to vector<8x32xf32>
    %30 = arith.addf %28, %29 : vector<8x32xf32>
    %31 = arith.truncf %30 : vector<8x32xf32> to vector<8x32xbf16>
    %c0_13 = arith.constant 0 : index
    %c0_14 = arith.constant 0 : index
    %c0_15 = arith.constant 0 : index
    %32 = vector.load %arg6[%c0_13, %c0_14, %c0_15] : memref<1x32x96xbf16, #tpu.memory_space<vmem>>, vector<1x32x96xbf16>
    %33 = vector.shape_cast %32 : vector<1x32x96xbf16> to vector<32x96xbf16>
    %cst_16 = arith.constant dense<0.000000e+00> : vector<8x96xf32>
    %34 = tpu.matmul %31, %33, %cst_16 {dimension_numbers = #tpu.dot_dimension_numbers<[1], [0], [0], [1], [0, 0, 1, 1], [], []>} : vector<8x32xbf16>, vector<32x96xbf16>, vector<8x96xf32> -> vector<8x96xf32>
    %c0_17 = arith.constant 0 : index
    %c0_18 = arith.constant 0 : index
    %c0_19 = arith.constant 0 : index
    %35 = vector.load %arg7[%c0_17, %c0_18, %c0_19] : memref<1x1x96xf32, #tpu.memory_space<vmem>>, vector<1x1x96xf32>
    %36 = vector.shape_cast %35 : vector<1x1x96xf32> to vector<1x96xf32>
    %37 = vector.broadcast %36 : vector<1x96xf32> to vector<8x96xf32>
    %38 = arith.addf %34, %37 : vector<8x96xf32>
    %39 = tpu.iota {dimensions = array<i32: 0>} : vector<8x8xi32>
    %40 = tpu.iota {dimensions = array<i32: 1>} : vector<8x8xi32>
    %41 = arith.cmpi sle, %40, %39 : vector<8x8xi32>
    %cst_20 = arith.constant 0.000000e+00 : f32
    %cst_21 = arith.constant -1.000000e+30 : f32
    %42 = vector.broadcast %cst_20 : f32 to vector<8x8xf32>
    %43 = vector.broadcast %cst_21 : f32 to vector<8x8xf32>
    %44 = arith.select %41, %42, %43 : vector<8x8xi1>, vector<8x8xf32>
    %c0_22 = arith.constant 0 : index
    %c0_23 = arith.constant 0 : index
    %c0_24 = arith.constant 0 : index
    %45 = vector.load %arg8[%c0_22, %c0_23, %c0_24] : memref<1x32x32xbf16, #tpu.memory_space<vmem>>, vector<1x32x32xbf16>
    %46 = vector.shape_cast %45 : vector<1x32x32xbf16> to vector<32x32xbf16>
    %cst_25 = arith.constant 0.000000e+00 : f32
    %47 = vector.broadcast %cst_25 : f32 to vector<8x32xf32>
    %48 = vector.extract_strided_slice %38 {offsets = [0, 0], sizes = [8, 8], strides = [1, 1]} : vector<8x96xf32> to vector<8x8xf32>
    %49 = vector.extract_strided_slice %38 {offsets = [0, 32], sizes = [8, 8], strides = [1, 1]} : vector<8x96xf32> to vector<8x8xf32>
    %50 = vector.extract_strided_slice %38 {offsets = [0, 64], sizes = [8, 8], strides = [1, 1]} : vector<8x96xf32> to vector<8x8xf32>
    %51 = arith.truncf %48 : vector<8x8xf32> to vector<8x8xbf16>
    %52 = arith.truncf %49 : vector<8x8xf32> to vector<8x8xbf16>
    %53 = tpu.transpose %52, [1, 0] : vector<8x8xbf16> -> vector<8x8xbf16>
    %cst_26 = arith.constant dense<0.000000e+00> : vector<8x8xf32>
    %54 = tpu.matmul %51, %53, %cst_26 {dimension_numbers = #tpu.dot_dimension_numbers<[1], [0], [0], [1], [0, 0, 1, 1], [], []>} : vector<8x8xbf16>, vector<8x8xbf16>, vector<8x8xf32> -> vector<8x8xf32>
    %55 = arith.addf %54, %44 : vector<8x8xf32>
    %cst_27 = arith.constant dense<0xFF800000> : vector<8xf32>
    %56 = vector.multi_reduction <maximumf>, %55, %cst_27 [1] : vector<8x8xf32> to vector<8xf32>
    %57 = vector.shape_cast %56 : vector<8xf32> to vector<8x1xf32>
    %58 = vector.broadcast %57 : vector<8x1xf32> to vector<8x8xf32>
    %59 = arith.subf %55, %58 : vector<8x8xf32>
    %60 = math.exp %59 : vector<8x8xf32>
    %cst_28 = arith.constant dense<0.000000e+00> : vector<8xf32>
    %61 = vector.multi_reduction <add>, %60, %cst_28 [1] : vector<8x8xf32> to vector<8xf32>
    %62 = vector.shape_cast %61 : vector<8xf32> to vector<8x1xf32>
    %63 = tpu.reciprocal %62 {approx = true} : vector<8x1xf32> -> vector<8x1xf32>
    %64 = vector.broadcast %63 : vector<8x1xf32> to vector<8x8xf32>
    %65 = arith.mulf %60, %64 : vector<8x8xf32>
    %66 = arith.truncf %65 : vector<8x8xf32> to vector<8x8xbf16>
    %67 = arith.truncf %50 : vector<8x8xf32> to vector<8x8xbf16>
    %cst_29 = arith.constant dense<0.000000e+00> : vector<8x8xf32>
    %68 = tpu.matmul %66, %67, %cst_29 {dimension_numbers = #tpu.dot_dimension_numbers<[1], [0], [0], [1], [0, 0, 1, 1], [], []>} : vector<8x8xbf16>, vector<8x8xbf16>, vector<8x8xf32> -> vector<8x8xf32>
    %69 = arith.truncf %68 : vector<8x8xf32> to vector<8x8xbf16>
    %70 = vector.extract_strided_slice %46 {offsets = [0, 0], sizes = [8, 32], strides = [1, 1]} : vector<32x32xbf16> to vector<8x32xbf16>
    %cst_30 = arith.constant dense<0.000000e+00> : vector<8x32xf32>
    %71 = tpu.matmul %69, %70, %cst_30 {dimension_numbers = #tpu.dot_dimension_numbers<[1], [0], [0], [1], [0, 0, 1, 1], [], []>} : vector<8x8xbf16>, vector<8x32xbf16>, vector<8x32xf32> -> vector<8x32xf32>
    %72 = arith.addf %47, %71 : vector<8x32xf32>
    %73 = vector.extract_strided_slice %38 {offsets = [0, 8], sizes = [8, 8], strides = [1, 1]} : vector<8x96xf32> to vector<8x8xf32>
    %74 = vector.extract_strided_slice %38 {offsets = [0, 40], sizes = [8, 8], strides = [1, 1]} : vector<8x96xf32> to vector<8x8xf32>
    %75 = vector.extract_strided_slice %38 {offsets = [0, 72], sizes = [8, 8], strides = [1, 1]} : vector<8x96xf32> to vector<8x8xf32>
    %76 = arith.truncf %73 : vector<8x8xf32> to vector<8x8xbf16>
    %77 = arith.truncf %74 : vector<8x8xf32> to vector<8x8xbf16>
    %78 = tpu.transpose %77, [1, 0] : vector<8x8xbf16> -> vector<8x8xbf16>
    %cst_31 = arith.constant dense<0.000000e+00> : vector<8x8xf32>
    %79 = tpu.matmul %76, %78, %cst_31 {dimension_numbers = #tpu.dot_dimension_numbers<[1], [0], [0], [1], [0, 0, 1, 1], [], []>} : vector<8x8xbf16>, vector<8x8xbf16>, vector<8x8xf32> -> vector<8x8xf32>
    %80 = arith.addf %79, %44 : vector<8x8xf32>
    %cst_32 = arith.constant dense<0xFF800000> : vector<8xf32>
    %81 = vector.multi_reduction <maximumf>, %80, %cst_32 [1] : vector<8x8xf32> to vector<8xf32>
    %82 = vector.shape_cast %81 : vector<8xf32> to vector<8x1xf32>
    %83 = vector.broadcast %82 : vector<8x1xf32> to vector<8x8xf32>
    %84 = arith.subf %80, %83 : vector<8x8xf32>
    %85 = math.exp %84 : vector<8x8xf32>
    %cst_33 = arith.constant dense<0.000000e+00> : vector<8xf32>
    %86 = vector.multi_reduction <add>, %85, %cst_33 [1] : vector<8x8xf32> to vector<8xf32>
    %87 = vector.shape_cast %86 : vector<8xf32> to vector<8x1xf32>
    %88 = tpu.reciprocal %87 {approx = true} : vector<8x1xf32> -> vector<8x1xf32>
    %89 = vector.broadcast %88 : vector<8x1xf32> to vector<8x8xf32>
    %90 = arith.mulf %85, %89 : vector<8x8xf32>
    %91 = arith.truncf %90 : vector<8x8xf32> to vector<8x8xbf16>
    %92 = arith.truncf %75 : vector<8x8xf32> to vector<8x8xbf16>
    %cst_34 = arith.constant dense<0.000000e+00> : vector<8x8xf32>
    %93 = tpu.matmul %91, %92, %cst_34 {dimension_numbers = #tpu.dot_dimension_numbers<[1], [0], [0], [1], [0, 0, 1, 1], [], []>} : vector<8x8xbf16>, vector<8x8xbf16>, vector<8x8xf32> -> vector<8x8xf32>
    %94 = arith.truncf %93 : vector<8x8xf32> to vector<8x8xbf16>
    %95 = vector.extract_strided_slice %46 {offsets = [8, 0], sizes = [8, 32], strides = [1, 1]} : vector<32x32xbf16> to vector<8x32xbf16>
    %cst_35 = arith.constant dense<0.000000e+00> : vector<8x32xf32>
    %96 = tpu.matmul %94, %95, %cst_35 {dimension_numbers = #tpu.dot_dimension_numbers<[1], [0], [0], [1], [0, 0, 1, 1], [], []>} : vector<8x8xbf16>, vector<8x32xbf16>, vector<8x32xf32> -> vector<8x32xf32>
    %97 = arith.addf %72, %96 : vector<8x32xf32>
    %98 = vector.extract_strided_slice %38 {offsets = [0, 16], sizes = [8, 8], strides = [1, 1]} : vector<8x96xf32> to vector<8x8xf32>
    %99 = vector.extract_strided_slice %38 {offsets = [0, 48], sizes = [8, 8], strides = [1, 1]} : vector<8x96xf32> to vector<8x8xf32>
    %100 = vector.extract_strided_slice %38 {offsets = [0, 80], sizes = [8, 8], strides = [1, 1]} : vector<8x96xf32> to vector<8x8xf32>
    %101 = arith.truncf %98 : vector<8x8xf32> to vector<8x8xbf16>
    %102 = arith.truncf %99 : vector<8x8xf32> to vector<8x8xbf16>
    %103 = tpu.transpose %102, [1, 0] : vector<8x8xbf16> -> vector<8x8xbf16>
    %cst_36 = arith.constant dense<0.000000e+00> : vector<8x8xf32>
    %104 = tpu.matmul %101, %103, %cst_36 {dimension_numbers = #tpu.dot_dimension_numbers<[1], [0], [0], [1], [0, 0, 1, 1], [], []>} : vector<8x8xbf16>, vector<8x8xbf16>, vector<8x8xf32> -> vector<8x8xf32>
    %105 = arith.addf %104, %44 : vector<8x8xf32>
    %cst_37 = arith.constant dense<0xFF800000> : vector<8xf32>
    %106 = vector.multi_reduction <maximumf>, %105, %cst_37 [1] : vector<8x8xf32> to vector<8xf32>
    %107 = vector.shape_cast %106 : vector<8xf32> to vector<8x1xf32>
    %108 = vector.broadcast %107 : vector<8x1xf32> to vector<8x8xf32>
    %109 = arith.subf %105, %108 : vector<8x8xf32>
    %110 = math.exp %109 : vector<8x8xf32>
    %cst_38 = arith.constant dense<0.000000e+00> : vector<8xf32>
    %111 = vector.multi_reduction <add>, %110, %cst_38 [1] : vector<8x8xf32> to vector<8xf32>
    %112 = vector.shape_cast %111 : vector<8xf32> to vector<8x1xf32>
    %113 = tpu.reciprocal %112 {approx = true} : vector<8x1xf32> -> vector<8x1xf32>
    %114 = vector.broadcast %113 : vector<8x1xf32> to vector<8x8xf32>
    %115 = arith.mulf %110, %114 : vector<8x8xf32>
    %116 = arith.truncf %115 : vector<8x8xf32> to vector<8x8xbf16>
    %117 = arith.truncf %100 : vector<8x8xf32> to vector<8x8xbf16>
    %cst_39 = arith.constant dense<0.000000e+00> : vector<8x8xf32>
    %118 = tpu.matmul %116, %117, %cst_39 {dimension_numbers = #tpu.dot_dimension_numbers<[1], [0], [0], [1], [0, 0, 1, 1], [], []>} : vector<8x8xbf16>, vector<8x8xbf16>, vector<8x8xf32> -> vector<8x8xf32>
    %119 = arith.truncf %118 : vector<8x8xf32> to vector<8x8xbf16>
    %120 = vector.extract_strided_slice %46 {offsets = [16, 0], sizes = [8, 32], strides = [1, 1]} : vector<32x32xbf16> to vector<8x32xbf16>
    %cst_40 = arith.constant dense<0.000000e+00> : vector<8x32xf32>
    %121 = tpu.matmul %119, %120, %cst_40 {dimension_numbers = #tpu.dot_dimension_numbers<[1], [0], [0], [1], [0, 0, 1, 1], [], []>} : vector<8x8xbf16>, vector<8x32xbf16>, vector<8x32xf32> -> vector<8x32xf32>
    %122 = arith.addf %97, %121 : vector<8x32xf32>
    %123 = vector.extract_strided_slice %38 {offsets = [0, 24], sizes = [8, 8], strides = [1, 1]} : vector<8x96xf32> to vector<8x8xf32>
    %124 = vector.extract_strided_slice %38 {offsets = [0, 56], sizes = [8, 8], strides = [1, 1]} : vector<8x96xf32> to vector<8x8xf32>
    %125 = vector.extract_strided_slice %38 {offsets = [0, 88], sizes = [8, 8], strides = [1, 1]} : vector<8x96xf32> to vector<8x8xf32>
    %126 = arith.truncf %123 : vector<8x8xf32> to vector<8x8xbf16>
    %127 = arith.truncf %124 : vector<8x8xf32> to vector<8x8xbf16>
    %128 = tpu.transpose %127, [1, 0] : vector<8x8xbf16> -> vector<8x8xbf16>
    %cst_41 = arith.constant dense<0.000000e+00> : vector<8x8xf32>
    %129 = tpu.matmul %126, %128, %cst_41 {dimension_numbers = #tpu.dot_dimension_numbers<[1], [0], [0], [1], [0, 0, 1, 1], [], []>} : vector<8x8xbf16>, vector<8x8xbf16>, vector<8x8xf32> -> vector<8x8xf32>
    %130 = arith.addf %129, %44 : vector<8x8xf32>
    %cst_42 = arith.constant dense<0xFF800000> : vector<8xf32>
    %131 = vector.multi_reduction <maximumf>, %130, %cst_42 [1] : vector<8x8xf32> to vector<8xf32>
    %132 = vector.shape_cast %131 : vector<8xf32> to vector<8x1xf32>
    %133 = vector.broadcast %132 : vector<8x1xf32> to vector<8x8xf32>
    %134 = arith.subf %130, %133 : vector<8x8xf32>
    %135 = math.exp %134 : vector<8x8xf32>
    %cst_43 = arith.constant dense<0.000000e+00> : vector<8xf32>
    %136 = vector.multi_reduction <add>, %135, %cst_43 [1] : vector<8x8xf32> to vector<8xf32>
    %137 = vector.shape_cast %136 : vector<8xf32> to vector<8x1xf32>
    %138 = tpu.reciprocal %137 {approx = true} : vector<8x1xf32> -> vector<8x1xf32>
    %139 = vector.broadcast %138 : vector<8x1xf32> to vector<8x8xf32>
    %140 = arith.mulf %135, %139 : vector<8x8xf32>
    %141 = arith.truncf %140 : vector<8x8xf32> to vector<8x8xbf16>
    %142 = arith.truncf %125 : vector<8x8xf32> to vector<8x8xbf16>
    %cst_44 = arith.constant dense<0.000000e+00> : vector<8x8xf32>
    %143 = tpu.matmul %141, %142, %cst_44 {dimension_numbers = #tpu.dot_dimension_numbers<[1], [0], [0], [1], [0, 0, 1, 1], [], []>} : vector<8x8xbf16>, vector<8x8xbf16>, vector<8x8xf32> -> vector<8x8xf32>
    %144 = arith.truncf %143 : vector<8x8xf32> to vector<8x8xbf16>
    %145 = vector.extract_strided_slice %46 {offsets = [24, 0], sizes = [8, 32], strides = [1, 1]} : vector<32x32xbf16> to vector<8x32xbf16>
    %cst_45 = arith.constant dense<0.000000e+00> : vector<8x32xf32>
    %146 = tpu.matmul %144, %145, %cst_45 {dimension_numbers = #tpu.dot_dimension_numbers<[1], [0], [0], [1], [0, 0, 1, 1], [], []>} : vector<8x8xbf16>, vector<8x32xbf16>, vector<8x32xf32> -> vector<8x32xf32>
    %147 = arith.addf %122, %146 : vector<8x32xf32>
    %c0_46 = arith.constant 0 : index
    %c0_47 = arith.constant 0 : index
    %c0_48 = arith.constant 0 : index
    %148 = vector.load %arg17[%c0_46, %c0_47, %c0_48] : memref<1x8x32xf32, #tpu.memory_space<vmem>>, vector<1x8x32xf32>
    %149 = vector.shape_cast %148 : vector<1x8x32xf32> to vector<8x32xf32>
    %150 = vector.shape_cast %147 : vector<8x32xf32> to vector<1x8x32xf32>
    tpu.vector_store %arg17[%c0_46, %c0_47, %c0_48], %150 {strides = array<i32>} : memref<1x8x32xf32, #tpu.memory_space<vmem>>, vector<1x8x32xf32>,
    %c0_49 = arith.constant 0 : index
    %c0_50 = arith.constant 0 : index
    %c0_51 = arith.constant 0 : index
    %151 = vector.load %arg17[%c0_49, %c0_50, %c0_51] : memref<1x8x32xf32, #tpu.memory_space<vmem>>, vector<1x8x32xf32>
    %152 = vector.shape_cast %151 : vector<1x8x32xf32> to vector<8x32xf32>
    %153 = arith.addf %4, %152 : vector<8x32xf32>
    %c0_52 = arith.constant 0 : index
    %c0_53 = arith.constant 0 : index
    %c0_54 = arith.constant 0 : index
    %154 = vector.load %arg9[%c0_52, %c0_53, %c0_54] : memref<1x1x32xf32, #tpu.memory_space<vmem>>, vector<1x1x32xf32>
    %155 = vector.shape_cast %154 : vector<1x1x32xf32> to vector<1x32xf32>
    %156 = vector.broadcast %155 : vector<1x32xf32> to vector<8x32xf32>
    %157 = arith.addf %153, %156 : vector<8x32xf32>
    %c0_55 = arith.constant 0 : index
    %c0_56 = arith.constant 0 : index
    %c0_57 = arith.constant 0 : index
    %158 = vector.load %arg10[%c0_55, %c0_56, %c0_57] : memref<1x1x32xf32, #tpu.memory_space<vmem>>, vector<1x1x32xf32>
    %159 = vector.shape_cast %158 : vector<1x1x32xf32> to vector<1x32xf32>
    %c0_58 = arith.constant 0 : index
    %c0_59 = arith.constant 0 : index
    %c0_60 = arith.constant 0 : index
    %160 = vector.load %arg11[%c0_58, %c0_59, %c0_60] : memref<1x1x32xf32, #tpu.memory_space<vmem>>, vector<1x1x32xf32>
    %161 = vector.shape_cast %160 : vector<1x1x32xf32> to vector<1x32xf32>
    %cst_61 = arith.constant dense<0.000000e+00> : vector<8xf32>
    %162 = vector.multi_reduction <add>, %157, %cst_61 [1] : vector<8x32xf32> to vector<8xf32>
    %163 = vector.shape_cast %162 : vector<8xf32> to vector<8x1xf32>
    %cst_62 = arith.constant 3.200000e+01 : f32
    %164 = vector.broadcast %cst_62 : f32 to vector<8x1xf32>
    %165 = arith.divf %163, %164 : vector<8x1xf32>
    %166 = arith.mulf %157, %157 : vector<8x32xf32>
    %cst_63 = arith.constant dense<0.000000e+00> : vector<8xf32>
    %167 = vector.multi_reduction <add>, %166, %cst_63 [1] : vector<8x32xf32> to vector<8xf32>
    %168 = vector.shape_cast %167 : vector<8xf32> to vector<8x1xf32>
    %cst_64 = arith.constant 3.200000e+01 : f32
    %169 = vector.broadcast %cst_64 : f32 to vector<8x1xf32>
    %170 = arith.divf %168, %169 : vector<8x1xf32>
    %171 = arith.mulf %165, %165 : vector<8x1xf32>
    %172 = arith.subf %170, %171 : vector<8x1xf32>
    %173 = vector.broadcast %165 : vector<8x1xf32> to vector<8x32xf32>
    %174 = arith.subf %157, %173 : vector<8x32xf32>
    %cst_65 = arith.constant 9.99999974E-6 : f32
    %175 = vector.broadcast %cst_65 : f32 to vector<8x1xf32>
    %176 = arith.addf %172, %175 : vector<8x1xf32>
    %177 = math.rsqrt %176 : vector<8x1xf32>
    %178 = vector.broadcast %177 : vector<8x1xf32> to vector<8x32xf32>
    %179 = arith.mulf %174, %178 : vector<8x32xf32>
    %180 = vector.broadcast %159 : vector<1x32xf32> to vector<8x32xf32>
    %181 = arith.mulf %179, %180 : vector<8x32xf32>
    %182 = vector.broadcast %161 : vector<1x32xf32> to vector<8x32xf32>
    %183 = arith.addf %181, %182 : vector<8x32xf32>
    %184 = arith.truncf %183 : vector<8x32xf32> to vector<8x32xbf16>
    %c0_66 = arith.constant 0 : index
    %c0_67 = arith.constant 0 : index
    %c0_68 = arith.constant 0 : index
    %185 = vector.load %arg12[%c0_66, %c0_67, %c0_68] : memref<1x32x128xbf16, #tpu.memory_space<vmem>>, vector<1x32x128xbf16>
    %186 = vector.shape_cast %185 : vector<1x32x128xbf16> to vector<32x128xbf16>
    %cst_69 = arith.constant dense<0.000000e+00> : vector<8x128xf32>
    %187 = tpu.matmul %184, %186, %cst_69 {dimension_numbers = #tpu.dot_dimension_numbers<[1], [0], [0], [1], [0, 0, 1, 1], [], []>} : vector<8x32xbf16>, vector<32x128xbf16>, vector<8x128xf32> -> vector<8x128xf32>
    %c0_70 = arith.constant 0 : index
    %c0_71 = arith.constant 0 : index
    %c0_72 = arith.constant 0 : index
    %188 = vector.load %arg13[%c0_70, %c0_71, %c0_72] : memref<1x1x128xf32, #tpu.memory_space<vmem>>, vector<1x1x128xf32>
    %189 = vector.shape_cast %188 : vector<1x1x128xf32> to vector<1x128xf32>
    %190 = vector.broadcast %189 : vector<1x128xf32> to vector<8x128xf32>
    %191 = arith.addf %187, %190 : vector<8x128xf32>
    %cst_73 = arith.constant 1.702000e+00 : f32
    %192 = vector.broadcast %cst_73 : f32 to vector<8x128xf32>
    %193 = arith.mulf %192, %191 : vector<8x128xf32>
    %194 = arith.negf %193 : vector<8x128xf32>
    %195 = math.exp %194 : vector<8x128xf32>
    %cst_74 = arith.constant 1.000000e+00 : f32
    %196 = vector.broadcast %cst_74 : f32 to vector<8x128xf32>
    %197 = arith.addf %196, %195 : vector<8x128xf32>
    %198 = arith.divf %196, %197 : vector<8x128xf32>
    %199 = arith.mulf %191, %198 : vector<8x128xf32>
    %200 = arith.truncf %199 : vector<8x128xf32> to vector<8x128xbf16>
    %c0_75 = arith.constant 0 : index
    %c0_76 = arith.constant 0 : index
    %c0_77 = arith.constant 0 : index
    %201 = vector.load %arg14[%c0_75, %c0_76, %c0_77] : memref<1x128x32xbf16, #tpu.memory_space<vmem>>, vector<1x128x32xbf16>
    %202 = vector.shape_cast %201 : vector<1x128x32xbf16> to vector<128x32xbf16>
    %cst_78 = arith.constant dense<0.000000e+00> : vector<8x32xf32>
    %203 = tpu.matmul %200, %202, %cst_78 {dimension_numbers = #tpu.dot_dimension_numbers<[1], [0], [0], [1], [0, 0, 1, 1], [], []>} : vector<8x128xbf16>, vector<128x32xbf16>, vector<8x32xf32> -> vector<8x32xf32>
    %c0_79 = arith.constant 0 : index
    %c0_80 = arith.constant 0 : index
    %c0_81 = arith.constant 0 : index
    %204 = vector.load %arg15[%c0_79, %c0_80, %c0_81] : memref<1x1x32xf32, #tpu.memory_space<vmem>>, vector<1x1x32xf32>
    %205 = vector.shape_cast %204 : vector<1x1x32xf32> to vector<1x32xf32>
    %206 = vector.broadcast %205 : vector<1x32xf32> to vector<8x32xf32>
    %207 = arith.addf %203, %206 : vector<8x32xf32>
    %208 = arith.addf %157, %207 : vector<8x32xf32>
    %209 = vector.shape_cast %208 : vector<8x32xf32> to vector<1x8x32xf32>
    %c0_82 = arith.constant 0 : index
    %c0_83 = arith.constant 0 : index
    %c0_84 = arith.constant 0 : index
    %210 = vector.load %arg16[%c0_82, %c0_83, %c0_84] : memref<1x8x32xf32, #tpu.memory_space<vmem>>, vector<1x8x32xf32>
    tpu.vector_store %arg16[%c0_82, %c0_83, %c0_84], %209 {strides = array<i32>} : memref<1x8x32xf32, #tpu.memory_space<vmem>>, vector<1x8x32xf32>,
    return
  }
  func.func @transform_0(%arg0: i32, %arg1: i32) -> (i32, i32, i32) {
    %c0_i32 = arith.constant 0 : i32
    %c0_i32_0 = arith.constant 0 : i32
    %c0_i32_1 = arith.constant 0 : i32
    return %arg0, %c0_i32, %c0_i32_0 : i32, i32, i32
  }
  func.func @transform_1(%arg0: i32, %arg1: i32) -> (i32, i32) {
    %c0_i32 = arith.constant 0 : i32
    %c0_i32_0 = arith.constant 0 : i32
    %c0_i32_1 = arith.constant 0 : i32
    return %c0_i32, %c0_i32_0 : i32, i32
  }
  func.func @transform_2(%arg0: i32, %arg1: i32) -> (i32, i32, i32) {
    %c0_i32 = arith.constant 0 : i32
    %c0_i32_0 = arith.constant 0 : i32
    %c0_i32_1 = arith.constant 0 : i32
    return %arg1, %c0_i32, %c0_i32_0 : i32, i32, i32
  }
  func.func @transform_3(%arg0: i32, %arg1: i32) -> (i32, i32, i32) {
    %c0_i32 = arith.constant 0 : i32
    %c0_i32_0 = arith.constant 0 : i32
    %c0_i32_1 = arith.constant 0 : i32
    return %arg1, %c0_i32, %c0_i32_0 : i32, i32, i32
  }
  func.func @transform_4(%arg0: i32, %arg1: i32) -> (i32, i32, i32) {
    %c0_i32 = arith.constant 0 : i32
    %c0_i32_0 = arith.constant 0 : i32
    %c0_i32_1 = arith.constant 0 : i32
    return %arg1, %c0_i32, %c0_i32_0 : i32, i32, i32
  }
  func.func @transform_5(%arg0: i32, %arg1: i32) -> (i32, i32, i32) {
    %c0_i32 = arith.constant 0 : i32
    %c0_i32_0 = arith.constant 0 : i32
    %c0_i32_1 = arith.constant 0 : i32
    return %arg1, %c0_i32, %c0_i32_0 : i32, i32, i32
  }
  func.func @transform_6(%arg0: i32, %arg1: i32) -> (i32, i32, i32) {
    %c0_i32 = arith.constant 0 : i32
    %c0_i32_0 = arith.constant 0 : i32
    %c0_i32_1 = arith.constant 0 : i32
    return %arg1, %c0_i32, %c0_i32_0 : i32, i32, i32
  }
  func.func @transform_7(%arg0: i32, %arg1: i32) -> (i32, i32, i32) {
    %c0_i32 = arith.constant 0 : i32
    %c0_i32_0 = arith.constant 0 : i32
    %c0_i32_1 = arith.constant 0 : i32
    return %arg1, %c0_i32, %c0_i32_0 : i32, i32, i32
  }
  func.func @transform_8(%arg0: i32, %arg1: i32) -> (i32, i32, i32) {
    %c0_i32 = arith.constant 0 : i32
    %c0_i32_0 = arith.constant 0 : i32
    %c0_i32_1 = arith.constant 0 : i32
    return %arg1, %c0_i32, %c0_i32_0 : i32, i32, i32
  }
  func.func @transform_9(%arg0: i32, %arg1: i32) -> (i32, i32, i32) {
    %c0_i32 = arith.constant 0 : i32
    %c0_i32_0 = arith.constant 0 : i32
    %c0_i32_1 = arith.constant 0 : i32
    return %arg1, %c0_i32, %c0_i32_0 : i32, i32, i32
  }
  func.func @transform_10(%arg0: i32, %arg1: i32) -> (i32, i32, i32) {
    %c0_i32 = arith.constant 0 : i32
    %c0_i32_0 = arith.constant 0 : i32
    %c0_i32_1 = arith.constant 0 : i32
    return %arg1, %c0_i32, %c0_i32_0 : i32, i32, i32
  }
  func.func @transform_11(%arg0: i32, %arg1: i32) -> (i32, i32, i32) {
    %c0_i32 = arith.constant 0 : i32
    %c0_i32_0 = arith.constant 0 : i32
    %c0_i32_1 = arith.constant 0 : i32
    return %arg1, %c0_i32, %c0_i32_0 : i32, i32, i32
  }
  func.func @transform_12(%arg0: i32, %arg1: i32) -> (i32, i32, i32) {
    %c0_i32 = arith.constant 0 : i32
    %c0_i32_0 = arith.constant 0 : i32
    %c0_i32_1 = arith.constant 0 : i32
    return %arg1, %c0_i32, %c0_i32_0 : i32, i32, i32
  }
  func.func @transform_13(%arg0: i32, %arg1: i32) -> (i32, i32, i32) {
    %c0_i32 = arith.constant 0 : i32
    %c0_i32_0 = arith.constant 0 : i32
    %c0_i32_1 = arith.constant 0 : i32
    return %arg1, %c0_i32, %c0_i32_0 : i32, i32, i32
  }
  func.func @transform_14(%arg0: i32, %arg1: i32) -> (i32, i32, i32) {
    %c0_i32 = arith.constant 0 : i32
    %c0_i32_0 = arith.constant 0 : i32
    %c0_i32_1 = arith.constant 0 : i32
    return %arg0, %c0_i32, %c0_i32_0 : i32, i32, i32
  }
}

module attributes {stable_mosaic.version = 11 : i64} {
  func.func @_pool_proj_kernel(%arg0: i32, %arg1: memref<2x32xf32, #tpu.memory_space<vmem>>, %arg2: memref<1x32xf32, #tpu.memory_space<vmem>>, %arg3: memref<1x32xf32, #tpu.memory_space<vmem>>, %arg4: memref<32x16xbf16, #tpu.memory_space<vmem>>, %arg5: memref<2x16xf32, #tpu.memory_space<vmem>>) attributes {dimension_semantics = [#tpu.dimension_semantics<arbitrary>], iteration_bounds = array<i64: 1>, scalar_prefetch = 0 : i64, scratch_operands = 0 : i64, tpu.core_type = #tpu.core_type<tc>, window_params = [{pipeline_mode = #tpu.pipeline_mode<synchronous>, transform_indices = @transform_0, window_bounds = array<i64: 2, 32>}, {pipeline_mode = #tpu.pipeline_mode<synchronous>, transform_indices = @transform_1, window_bounds = array<i64: 1, 32>}, {pipeline_mode = #tpu.pipeline_mode<synchronous>, transform_indices = @transform_2, window_bounds = array<i64: 1, 32>}, {pipeline_mode = #tpu.pipeline_mode<synchronous>, transform_indices = @transform_3, window_bounds = array<i64: 32, 16>}, {pipeline_mode = #tpu.pipeline_mode<synchronous>, transform_indices = @transform_4, window_bounds = array<i64: 2, 16>}]} {
    %c0 = arith.constant 0 : index
    %c0_0 = arith.constant 0 : index
    %0 = vector.load %arg1[%c0, %c0_0] : memref<2x32xf32, #tpu.memory_space<vmem>>, vector<2x32xf32>
    %c0_1 = arith.constant 0 : index
    %c0_2 = arith.constant 0 : index
    %1 = vector.load %arg2[%c0_1, %c0_2] : memref<1x32xf32, #tpu.memory_space<vmem>>, vector<1x32xf32>
    %c0_3 = arith.constant 0 : index
    %c0_4 = arith.constant 0 : index
    %2 = vector.load %arg3[%c0_3, %c0_4] : memref<1x32xf32, #tpu.memory_space<vmem>>, vector<1x32xf32>
    %cst = arith.constant dense<0.000000e+00> : vector<2xf32>
    %3 = vector.multi_reduction <add>, %0, %cst [1] : vector<2x32xf32> to vector<2xf32>
    %4 = vector.shape_cast %3 : vector<2xf32> to vector<2x1xf32>
    %cst_5 = arith.constant 3.200000e+01 : f32
    %5 = vector.broadcast %cst_5 : f32 to vector<2x1xf32>
    %6 = arith.divf %4, %5 : vector<2x1xf32>
    %7 = arith.mulf %0, %0 : vector<2x32xf32>
    %cst_6 = arith.constant dense<0.000000e+00> : vector<2xf32>
    %8 = vector.multi_reduction <add>, %7, %cst_6 [1] : vector<2x32xf32> to vector<2xf32>
    %9 = vector.shape_cast %8 : vector<2xf32> to vector<2x1xf32>
    %cst_7 = arith.constant 3.200000e+01 : f32
    %10 = vector.broadcast %cst_7 : f32 to vector<2x1xf32>
    %11 = arith.divf %9, %10 : vector<2x1xf32>
    %12 = arith.mulf %6, %6 : vector<2x1xf32>
    %13 = arith.subf %11, %12 : vector<2x1xf32>
    %14 = vector.broadcast %6 : vector<2x1xf32> to vector<2x32xf32>
    %15 = arith.subf %0, %14 : vector<2x32xf32>
    %cst_8 = arith.constant 9.99999974E-6 : f32
    %16 = vector.broadcast %cst_8 : f32 to vector<2x1xf32>
    %17 = arith.addf %13, %16 : vector<2x1xf32>
    %18 = math.rsqrt %17 : vector<2x1xf32>
    %19 = vector.broadcast %18 : vector<2x1xf32> to vector<2x32xf32>
    %20 = arith.mulf %15, %19 : vector<2x32xf32>
    %21 = vector.broadcast %1 : vector<1x32xf32> to vector<2x32xf32>
    %22 = arith.mulf %20, %21 : vector<2x32xf32>
    %23 = vector.broadcast %2 : vector<1x32xf32> to vector<2x32xf32>
    %24 = arith.addf %22, %23 : vector<2x32xf32>
    %25 = arith.truncf %24 : vector<2x32xf32> to vector<2x32xbf16>
    %c0_9 = arith.constant 0 : index
    %c0_10 = arith.constant 0 : index
    %26 = vector.load %arg4[%c0_9, %c0_10] : memref<32x16xbf16, #tpu.memory_space<vmem>>, vector<32x16xbf16>
    %cst_11 = arith.constant dense<0.000000e+00> : vector<2x16xf32>
    %27 = tpu.matmul %25, %26, %cst_11 {dimension_numbers = #tpu.dot_dimension_numbers<[1], [0], [0], [1], [0, 0, 1, 1], [], []>} : vector<2x32xbf16>, vector<32x16xbf16>, vector<2x16xf32> -> vector<2x16xf32>
    %c0_12 = arith.constant 0 : index
    %c0_13 = arith.constant 0 : index
    %28 = vector.load %arg5[%c0_12, %c0_13] : memref<2x16xf32, #tpu.memory_space<vmem>>, vector<2x16xf32>
    tpu.vector_store %arg5[%c0_12, %c0_13], %27 {strides = array<i32>} : memref<2x16xf32, #tpu.memory_space<vmem>>, vector<2x16xf32>,
    return
  }
  func.func @transform_0(%arg0: i32) -> (i32, i32) {
    %c0_i32 = arith.constant 0 : i32
    %c0_i32_0 = arith.constant 0 : i32
    %c0_i32_1 = arith.constant 0 : i32
    return %c0_i32, %c0_i32_0 : i32, i32
  }
  func.func @transform_1(%arg0: i32) -> (i32, i32) {
    %c0_i32 = arith.constant 0 : i32
    %c0_i32_0 = arith.constant 0 : i32
    %c0_i32_1 = arith.constant 0 : i32
    return %c0_i32, %c0_i32_0 : i32, i32
  }
  func.func @transform_2(%arg0: i32) -> (i32, i32) {
    %c0_i32 = arith.constant 0 : i32
    %c0_i32_0 = arith.constant 0 : i32
    %c0_i32_1 = arith.constant 0 : i32
    return %c0_i32, %c0_i32_0 : i32, i32
  }
  func.func @transform_3(%arg0: i32) -> (i32, i32) {
    %c0_i32 = arith.constant 0 : i32
    %c0_i32_0 = arith.constant 0 : i32
    %c0_i32_1 = arith.constant 0 : i32
    return %c0_i32, %c0_i32_0 : i32, i32
  }
  func.func @transform_4(%arg0: i32) -> (i32, i32) {
    %c0_i32 = arith.constant 0 : i32
    %c0_i32_0 = arith.constant 0 : i32
    %c0_i32_1 = arith.constant 0 : i32
    return %c0_i32, %c0_i32_0 : i32, i32
  }
}

</mosaic_0001>

<bundles_post_ra>
// kernel: text_encoder_forward.3
= control target key start
LH: loop header
LB: loop body
LE: loop exit
PB: predicated region body
PF: predicated region fallthrough
CT: control target
= control target key end

     0   :  { %vm22_vm0 = vcmask 254976   ;;  %s232_s0 = inlined_call_operand.vmem [shape: f32[2,32], index: 0, kind: input, shape index: {}]   ;;  %s233_s1 = inlined_call_operand.vmem [shape: f32[1,32], index: 1, kind: input, shape index: {}]   ;;  %s234_s2 = inlined_call_operand.vmem [shape: f32[1,32], index: 2, kind: input, shape index: {}]   ;;  %s235_s3 = inlined_call_operand.vmem [shape: bf16[32,16], index: 3, kind: input, shape index: {}]   ;;  %s236_s4 = inlined_call_operand.hbm [shape: f32[2,16], index: 4, kind: output, shape index: {}]  }
   0x1   :  { %v19_v0 = vld [vmem:[%s232_s0] sm:$0x3] }
   0x2   :  { %v23_v1 = vsel %vm22_vm0, %v19_v0, 0.0  ;;  %v28_v2 = vmul.f32 %v19_v0, %v19_v0 }
   0x3   :  { %24 = vadd.xlane.f32.xlu0 %v23_v1 }
   0x4   :  { %9 = vsyncpa [#allocation3], 0  ;;  %v29_v3 = vsel %vm22_vm0, %v28_v2, 0.0  ;;  %v149_v4 = vld [vmem:[%s235_s3] sm:$0xff]   ;;  %v177_v5 = vmov 0.0   ;;  %vm178_vm1 = vmmov 0  }
   0x5   :  { %138 = vmatprep.subr.bf16.mxu0 %v177_v5  ;;  %142 = vmatprep.mubr.msk.bf16.mxu0 %vm178_vm1, %v177_v5  ;;  %v150_v6 = vld [vmem:[%s235_s3 + $0x8] sm:$0xff]   ;;  %v130_v16 = vld [vmem:[%s233_s1] ss:$0 sm:$0xff]  ;;  %vm70_vm2 = vcmask 261120   ;;  %s179_s3 = smov [#allocation2]   ;;  %vm114_vm3 = vcmask 123904  }
   0x6   :  { %139 = vmatpush3.bf16.msra.mxu0 %v149_v4  ;;  %v131_v18 = vld [vmem:[%s234_s2] ss:$0 sm:$0xff]  ;;  %s122_s24 = sshll.u32 %s179_s3, 4  ;;  %s123_s24 = int_to_ptr.vmem [resolvable:$true] %s122_s24 }
   0x7   :  { %30 = vadd.xlane.f32.xlu0 %v29_v3  ;;  %140 = vmatprep.subr.bf16.mxu0 %v177_v5  ;;  %s153_s25 = scalar_lea.vmem %s123_s24, 32  ;;  %p158_p1 = scmp.lt.s32.totalorder %s123_s24, %s123_s24 }
   0x8   :  { %p154_p0 = scmp.ne.s32.totalorder %s123_s24, %s153_s25  ;;  %p159_p2 = scmp.lt.s32.totalorder %s153_s25, %s153_s25 }
   0xa   :  { %141 = vmatpush3.bf16.msra.mxu0 %v150_v6  ;;  %p160_p3 = por %p159_p2, %p158_p1 }
   0xc   :  { %p161_p4 = pnand %p160_p3, %p154_p0 }
  0x90   :  { %v25_v7 = vpop.xlane.xlu0 %24 }
  0x91   :  { %v27_v8 = vmul.f32 0.03125, %v25_v7 }
  0x93   :  { %v33_v10 = vmul.f32 %v27_v8, %v27_v8  ;;  %v35_v14 = vsub.f32 %v19_v0, %v27_v8 }
  0x94   :  { %v31_v9 = vpop.xlane.xlu0 %30 }
  0x95   :  { %v32_v11 = vmul.f32 0.03125, %v31_v9 }
  0x97   :  { %v34_v12 = vsub.f32 %v32_v11, %v33_v10 }
  0x99   :  { %v36_v13 = vadd.f32 1e-05, %v34_v12 }
  0x9b   :  { %151 = vrsqrt.f32 %v36_v13 }
  0xa5   :  { %v152_v15 = vpop.eup %151 }
  0xa6   :  { %v38_v17 = vmul.f32 %v152_v15, %v35_v14 }
  0xa8   :  { %v45_v19 = vmul.f32 %v130_v16, %v38_v17 }
  0xaa   :  { %v52_v20 = vadd.f32 %v131_v18, %v45_v19 }
  0xac   :  { %v53_v21 = vpack.c.bf16 %v52_v20, %v52_v20 }
  0xae   :  { %143 = vmatmul.mubr.msk.bf16.vlgmr.msra.gmra.mrb[0].mxu0 %vm70_vm2, %v53_v21 }
 0x181   :  { %v108_v22 = vpop.f32.mrb[0].mxu0 }
 0x182   :  { %115 = vst.msk [vmem:[#allocation2] sm:$0x3] %vm114_vm3, %v108_v22  ;;  %v144_v23 = vpop.f32.mrb[1].mxu0 }
 0x183   :  { %v111_v24 = vpop.f32.mrb[2].mxu0 }
 0x184   :  { %164 = shalt.err (!%p161_p4)
}
 0x185   :  { %s165_s26 = scalar_lea.hbm %s236_s4, 32 }
 0x186   :  { %p166_p5 = scmp.ne.s32.totalorder %s236_s4, %s165_s26  ;;  %p169_p6 = scmp.lt.u32.totalorder %s165_s26, %s236_s4 }
 0x188   :  { %p171_p7 = pnand %p169_p6, %p166_p5 }
 0x18a   :  { %174 = shalt.err (!%p171_p7)
}
 0x18b   :  { %125 = dma.vmem_to_hbm [thread:$0]  %s123_s24, 32, %s236_s4, [#allocation3]   ;;  %v145_v25 = vpop.f32.mrb[3].mxu0 }
 0x18c   :  { %175 = dma.done.wait [#allocation3], 32  }
 0x18d   :  { %176 = vsyncadd [#allocation3], 4294967264 }
 0x18e   :  { %129 = vsyncpa [#allocation3], 1 }

// kernel: text_encoder_forward.2
= control target key start
LH: loop header
LB: loop body
LE: loop exit
PB: predicated region body
PF: predicated region fallthrough
CT: control target
= control target key end

     0   :  { %s3219_s0 = inlined_call_operand.hbm [shape: f32[2,8,32], index: 0, kind: input, shape index: {}]   ;;  %s3220_s1 = inlined_call_operand.hbm [shape: f32[8,32], index: 1, kind: input, shape index: {}]   ;;  %s3221_s2 = inlined_call_operand.vmem [shape: f32[2,1,32], index: 2, kind: input, shape index: {}, may-alias: {2,8}]   ;;  %s3222_s3 = inlined_call_operand.vmem [shape: f32[2,1,32], index: 3, kind: input, shape index: {}, may-alias: {3,7,9,13}]   ;;  %s3223_s4 = inlined_call_operand.vmem [shape: bf16[2,32,96], index: 4, kind: input, shape index: {}]   ;;  %s3224_s5 = inlined_call_operand.vmem [shape: f32[2,1,96], index: 5, kind: input, shape index: {}]   ;;  %s3225_s6 = inlined_call_operand.hbm [shape: bf16[2,32,32], index: 6, kind: input, shape index: {}]   ;;  %s3226_s7 = inlined_call_operand.vmem [shape: f32[2,1,32], index: 7, kind: input, shape index: {}, may-alias: {3,7,9,13}]   ;;  %s3227_s8 = inlined_call_operand.vmem [shape: f32[2,1,32], index: 8, kind: input, shape index: {}, may-alias: {2,8}]   ;;  %s3228_s9 = inlined_call_operand.vmem [shape: f32[2,1,32], index: 9, kind: input, shape index: {}, may-alias: {3,7,9,13}]   ;;  %s3229_s10 = inlined_call_operand.vmem [shape: bf16[2,32,128], index: 10, kind: input, shape index: {}]   ;;  %s3230_s11 = inlined_call_operand.vmem [shape: f32[2,1,128], index: 11, kind: input, shape index: {}]   ;;  %s3231_s12 = inlined_call_operand.hbm [shape: bf16[2,128,32], index: 12, kind: input, shape index: {}]   ;;  %s3232_s13 = inlined_call_operand.vmem [shape: f32[2,1,32], index: 13, kind: input, shape index: {}, may-alias: {3,7,9,13}]   ;;  %s3233_s14 = inlined_call_operand.vmem [shape: f32[2,8,32], index: 14, kind: output, shape index: {}]  }
   0x1   :  { %3254 = sst [smem:[#allocation23_spill]] %s3219_s0 }
   0x2   :  { %3255 = sst [smem:[#allocation24_spill]] %s3220_s1 }
   0x3   :  { %3256 = sst [smem:[#allocation25_spill]] %s3223_s4 }
   0x4   :  { %3257 = sst [smem:[#allocation26_spill]] %s3224_s5 }
   0x5   :  { %3258 = sst [smem:[#allocation27_spill]] %s3225_s6 }
   0x6   :  { %3259 = sst [smem:[#allocation28_spill]] %s3226_s7 }
   0x7   :  { %3260 = sst [smem:[#allocation29_spill]] %s3227_s8 }
   0x8   :  { %3261 = sst [smem:[#allocation30_spill]] %s3228_s9 }
   0x9   :  { %3262 = sst [smem:[#allocation31_spill]] %s3229_s10 }
   0xa   :  { %3263 = sst [smem:[#allocation32_spill]] %s3230_s11 }
   0xb   :  { %3264 = sst [smem:[#allocation33_spill]] %s3231_s12 }
   0xc   :  { %3265 = sst [smem:[#allocation34_spill]] %s3232_s13 }
   0xd   :  { %3266 = sst [smem:[#allocation35_spill]] %s3233_s14 }
   0xe   :  { %19 = vsyncpa [#allocation4], 0 }
   0xf   :  { %21 = vsyncpa [#allocation4 + $0x1], 0 }
  0x10   :  { %22 = vsyncpa [#allocation6], 0  ;;  %s2645_s29 = smov 0   ;;  %s2647_s30 = smov 0  }
  0x11   :  { %s2649_s15 = smov 0   ;;  %s2651_s16 = smov 0  }
  0x12   :  { %s2653_s17 = smov 0   ;;  %s2655_s18 = smov 0  }
  0x13   :  { %s2657_s19 = smov 0   ;;  %s2659_s20 = smov 0  }
  0x14   :  { %s2661_s21 = smov 0   ;;  %s2663_s22 = smov 0  }
  0x15   :  { %s2665_s23 = smov 0  }
  0x16 LB: > { %3267 = sst [smem:[#allocation12_spill]] %s2512_s30  ;;  %s37_s24 = sadd.s32 1, %s2540_s21  ;;  %s2548_s23 = sphi %s2665_s23, %s28_s23   ;;  %s2544_s22 = sphi %s2663_s22, %s3332_s22   ;;  %s2540_s21 = sphi %s2661_s21, %s3331_s21   ;;  %s2536_s20 = sphi %s2659_s20, %s3330_s20   ;;  %s2532_s19 = sphi %s2657_s19, %s3329_s19   ;;  %s2528_s18 = sphi %s2655_s18, %s3328_s18   ;;  %s2524_s17 = sphi %s2653_s17, %s3327_s17   ;;  %s2520_s16 = sphi %s2651_s16, %s3326_s16   ;;  %s2516_s15 = sphi %s2649_s15, %s3325_s15   ;;  %s2512_s30 = sphi %s2647_s30, %s3324_s30   ;;  %s2508_s29 = sphi %s2645_s29, %s3323_s29  }
  0x17   : > { %3268 = sst [smem:[#allocation13_spill]] %s2516_s15  ;;  %s40_s25 = sadd.s32 1, %s2544_s22 }
  0x18   : > { %3269 = sst [smem:[#allocation14_spill]] %s2524_s17  ;;  %p38_p0 = scmp.ge.s32.totalorder %s37_s24, 2 }
  0x19   : > { %3270 = sst [smem:[#allocation15_spill]] %s2528_s18  ;;  %s47_s26 = sadd.s32 1, %s2528_s18 }
  0x1a   : > { %3271 = sst [smem:[#allocation16_spill]] %s2540_s21  ;;  %p54_p1 = scmp.ne.s32.totalorder %s2528_s18, %s2524_s17 }
  0x1b   : > { %3272 = sst [smem:[#allocation17_spill]] %s2544_s22  ;;  %p55_p2 = scmp.eq.s32.totalorder %s2548_s23, 0 }
  0x1c   : > { %3273 = sst [smem:[#allocation18_spill]] %s2548_s23  ;;  %s3334_s24 = smov (%p38_p0, %s37_s24), 0 }
  0x1d   : > { %3274 = sst [smem:[#allocation19_spill]] %s3334_s24  ;;  %s3336_s25 = smov (!%p38_p0, %s40_s25), %s2544_s22 }
  0x1e   : > { %p2709_p3 = por %p55_p2, %p54_p1  ;;  %s195_s28 = ssub.s32 %s2540_s21, %s3334_s24 }
  0x1f   : > { %p42_p4 = scmp.ge.s32.totalorder %s3336_s25, 2  ;;  %p196_p5 = scmp.eq.s32.totalorder %s195_s28, 0 }
  0x20   : > { %s198_s14 = sadd.s32 1, %s2516_s15  ;;  %p205_p6 = scmp.ne.s32.totalorder %s2516_s15, %s2512_s30 }
  0x21   : > { %s3338_s25 = smov (%p42_p4, %s3336_s25), 0  ;;  %p2189_p9 = scmp.lt.s32.totalorder %s2548_s23, 4 }
  0x22   : > { %3276 = sst [smem:[#allocation20_spill]] %s3338_s25  ;;  %s44_s11 = ssub.s32 %s2544_s22, %s3338_s25 }
  0x23   : > { %s2721_s13 = scalar_select %p196_p5, %s2516_s15, %s198_s14  }
  0x24   : > { %p2725_p7 = por %p205_p6, %p55_p2  ;;  %p45_p8 = scmp.eq.s32.totalorder %s44_s11, 0 }
  0x25   : > { %3277 = sst [smem:[#allocation21_spill]] %s2721_s13  ;;  %s454_s24 = sand.u32 1, %s2548_s23  }
  0x26   : > { %s2732_s9 = scalar_select %p45_p8, %s2528_s18, %s47_s26  }
  0x27   : > { %s456_s28 = sand.u32 1, %s2528_s18   ;;  %s1946_s7 = sshll.u32 %s2544_s22, 7 }
  0x28   : > { %3279 = sst [smem:[#allocation22_spill]] %s2732_s9  ;;  %s1945_s8 = sshll.u32 %s456_s28, 3 }
  0x29   : > { %s3280_s0 = sld [smem:[#allocation23_spill]]  ;;  %s458_s25 = scalar_lea.vmem [#allocation3], %s1945_s8 }
  0x2a   : > { %s465_s13 = sshll.u32 %s458_s25, 4  ;;  %p2743_p10 = pnand %p2189_p9, %p2709_p3  ;;  %s2747_s13 = int_to_ptr.vmem [resolvable:$true] %s465_s13 }
  0x2b   : > { %p2751_p11 = pnand %p2189_p9, %p2725_p7  ;;  %s500_s5 = sand.u32 1, %s2516_s15  }
  0x2c   : > { %p2334_p13 = pneg %p2743_p10 }
  0x2d   : > { %s3282_s4 = scalar_select %p2751_p11, 1, 0 }
  0x2f   : > { %s2739_s14 = scalar_lea.hbm %s3280_s0, %s1946_s7  ;;  %s2756_s7 = scalar_lea.sflag [#allocation4], %s454_s24 }
  0x30   : > { %s2332_s8 = scalar_lea.hbm %s2739_s14, 128  ;;  %s2337_s27 = scalar_lea.hbm %s3280_s0, 256 }
  0x31   : > { %p2333_p12 = scmp.ne.s32.totalorder %s2739_s14, %s2332_s8  ;;  %p2338_p2 = scmp.lt.u32.totalorder %s2739_s14, %s3280_s0 }
  0x32   : > { %p2339_p3 = scmp.lt.u32.totalorder %s2337_s27, %s2332_s8  ;;  %p2341_p5 = scmp.lt.u32.totalorder %s2332_s8, %s2739_s14 }
  0x33   : > { %p2335_p0 = pnand %p2334_p13, %p2333_p12 }
  0x34   : > { %p2340_p4 = por %p2339_p3, %p2338_p2 }
  0x35   : > { %p2336_p1 = pneg %p2335_p0 }
  0x36   : > { %p2342_p6 = por %p2341_p5, %p2340_p4 }
  0x38   : > { %p2343_p7 = pnand %p2342_p6, %p2336_p1 }
  0x3a   : > { %2346 = shalt.err (!%p2343_p7)
}
  0x3b   : > { %s2347_s24 = scalar_lea.vmem %s2747_s13, 128  ;;  %s2550_s25 = smov [#allocation3]  }
  0x3c   : > { %p2348_p8 = scmp.ne.s32.totalorder %s2747_s13, %s2347_s24  ;;  %s2352_s26 = sshll.u32 %s2550_s25, 4  ;;  %s2353_s26 = int_to_ptr.vmem [resolvable:$false] %s2352_s26 }
  0x3d   : > { %s2354_s10 = scalar_lea.vmem %s2353_s26, 256  ;;  %p2355_p0 = scmp.lt.s32.totalorder %s2747_s13, %s2353_s26 }
  0x3e   : > { %p2350_p9 = pnand %p2348_p8, %p2334_p13  ;;  %p2356_p2 = scmp.lt.s32.totalorder %s2354_s10, %s2347_s24 }
  0x40   : > { %p2351_p12 = pneg %p2350_p9  ;;  %p2357_p3 = por %p2356_p2, %p2355_p0 }
  0x42   : > { %p2358_p4 = pnand %p2357_p3, %p2351_p12 }
  0x44   : > { %2361 = shalt.err (!%p2358_p4)
}
  0x45   : > { %2181 = dma.hbm_to_vmem [thread:$0]  (!%p2743_p10), %s2739_s14, 128, %s2747_s13, %s2756_s7  }
  0x46   : > { %s1947_s8 = sshll.u32 %s500_s5, 4  ;;  %s2001_s27 = sshll.u32 %s2540_s21, 8 }
  0x47   : > { %s3283_s6 = sld [smem:[#allocation27_spill]]  ;;  %s502_s11 = scalar_lea.vmem [#allocation7], %s1947_s8 }
  0x48   : > { %s509_s26 = sshll.u32 %s502_s11, 4  ;;  %p3241_p10 = pneg %p2751_p11  ;;  %s2792_s26 = int_to_ptr.vmem [resolvable:$true] %s509_s26 }
  0x4d   : > { %s2790_s24 = scalar_lea.hbm %s3283_s6, %s2001_s27  ;;  %s2367_s27 = scalar_lea.hbm %s3283_s6, 512 }
  0x4e   : > { %s2362_s10 = scalar_lea.hbm %s2790_s24, 256  ;;  %p2368_p6 = scmp.lt.u32.totalorder %s2790_s24, %s3283_s6 }
  0x4f   : > { %p2363_p13 = scmp.ne.s32.totalorder %s2790_s24, %s2362_s10  ;;  %p2369_p7 = scmp.lt.u32.totalorder %s2367_s27, %s2362_s10 }
  0x50   : > { %p2371_p9 = scmp.lt.u32.totalorder %s2362_s10, %s2790_s24 }
  0x51   : > { %p2365_p1 = pnand %p3241_p10, %p2363_p13  ;;  %p2370_p8 = por %p2369_p7, %p2368_p6 }
  0x53   : > { %p2366_p5 = pneg %p2365_p1  ;;  %p2372_p12 = por %p2371_p9, %p2370_p8 }
  0x55   : > { %p2373_p0 = pnand %p2372_p12, %p2366_p5 }
  0x57   : > { %2376 = shalt.err (!%p2373_p0)
}
  0x58   : > { %s2377_s8 = scalar_lea.vmem %s2792_s26, 256  ;;  %s2551_s11 = smov [#allocation7]  }
  0x59   : > { %p2378_p2 = scmp.ne.s32.totalorder %s2792_s26, %s2377_s8  ;;  %s2382_s13 = sshll.u32 %s2551_s11, 4  ;;  %s2383_s13 = int_to_ptr.vmem [resolvable:$false] %s2382_s13 }
  0x5a   : > { %s2384_s14 = scalar_lea.vmem %s2383_s13, 512  ;;  %p2385_p13 = scmp.lt.s32.totalorder %s2792_s26, %s2383_s13 }
  0x5b   : > { %p2380_p3 = pnand %p2378_p2, %p3241_p10  ;;  %p2386_p1 = scmp.lt.s32.totalorder %s2384_s14, %s2377_s8 }
  0x5d   : > { %p2381_p4 = pneg %p2380_p3  ;;  %p2387_p6 = por %p2386_p1, %p2385_p13 }
  0x5f   : > { %p2388_p7 = pnand %p2387_p6, %p2381_p4 }
  0x61   : > { %2391 = shalt.err (!%p2388_p7)
}
  0x62   : > { %s3237_s10 = smov 64   ;;  %s3238_s27 = smov 4  }
  0x63   : > { %2184 = dma.hbm_to_vmem [thread:$0]  (!%p2751_p11), %s2790_s24, 256, %s2792_s26, %s2756_s7, %s3237_s10, %s3237_s10, %s3238_s27  }
  0x64   : > { %s3236_s28 = sadd.s32 4294967295, %s2548_s23   ;;  %p60_p5 = scmp.ne.s32.totalorder %s2524_s17, %s2520_s16 }
  0x65   : > { %p2828_p8 = scmp.eq.s32.totalorder %s3236_s28, 0  ;;  %p211_p9 = scmp.ne.s32.totalorder %s2512_s30, %s2508_s29 }
  0x66   : > { %p1942_p12 = scmp.ge.s32.totalorder %s2548_s23, 1  ;;  %p430_p2 = scmp.lt.s32.totalorder %s2548_s23, 5 }
  0x67   : > { %s3284_s25 = scalar_select %p2828_p8, 1, 0 }
  0x68   : > { %p2837_p0 = por %p2828_p8, %p60_p5  ;;  %p2844_p3 = por %p211_p9, %p2828_p8 }
  0x69   : > { %p2848_p4 = pnand %p1942_p12, %p430_p2  ;;  %s2554_s26 = smov [#allocation5]  }
  0x6a   : > { %s3285_s8 = scalar_select %p2837_p0, 1, 0 }
  0x6b   : > { %s3286_s24 = scalar_select %p2844_p3, 1, 0 }
  0x6c   : > { %s3287_s16 = scalar_select %p2848_p4, 1, 0 }
  0x6d   : > { %s443_s11 = sshll.u32 %s2554_s26, 4  ;;  %s1950_s29 = sshll.u32 %s500_s5, 6  ;;  %s444_s11 = int_to_ptr.vmem [resolvable:$true] %s443_s11 }
  0x6e   : > { %p2174_p13 = pneg %p2848_p4  ;;  %s2002_s13 = sshll.u32 %s2540_s21, 10 }
  0x6f   : > { %s3289_s12 = sld [smem:[#allocation33_spill]]  ;;  %s555_s0 = scalar_lea.vmem [#allocation8], %s1950_s29 }
  0x70   : > { %p2859_p1 = pnand %p2174_p13, %p2828_p8  ;;  %s562_s6 = sshll.u32 %s555_s0, 4  ;;  %s2868_s6 = int_to_ptr.vmem [resolvable:$true] %s562_s6 }
  0x71   : > { %s3290_s1 = sld [smem:[#allocation24_spill]] }
  0x72   : > { %p2394_p7 = pneg %p2859_p1 }
  0x75   : > { %s2866_s27 = scalar_lea.hbm %s3289_s12, %s2002_s13 }
  0x77   : > { %s2392_s22 = scalar_lea.hbm %s3290_s1, 128 }
  0x78   : > { %p2393_p6 = scmp.ne.s32.totalorder %s3290_s1, %s2392_s22  ;;  %p2399_p12 = scmp.lt.u32.totalorder %s2392_s22, %s3290_s1 }
  0x7a   : > { %p2395_p5 = pnand %p2394_p7, %p2393_p6 }
  0x7c   : > { %p2396_p9 = pneg %p2395_p5 }
  0x7e   : > { %p2401_p2 = pnand %p2399_p12, %p2396_p9 }
  0x80   : > { %2404 = shalt.err (!%p2401_p2)
}
  0x81   : > { %s2405_s0 = scalar_lea.vmem %s444_s11, 128  ;;  %p2413_p8 = scmp.lt.s32.totalorder %s444_s11, %s444_s11 }
  0x82   : > { %p2406_p13 = scmp.ne.s32.totalorder %s444_s11, %s2405_s0  ;;  %p2414_p0 = scmp.lt.s32.totalorder %s2405_s0, %s2405_s0 }
  0x84   : > { %p2408_p10 = pnand %p2406_p13, %p2394_p7  ;;  %p2415_p4 = por %p2414_p0, %p2413_p8 }
  0x86   : > { %p2409_p3 = pneg %p2408_p10 }
  0x88   : > { %p2416_p11 = pnand %p2415_p4, %p2409_p3 }
  0x8a   : > { %2419 = shalt.err (!%p2416_p11)
}
  0x8b   : > { %2177 = dma.hbm_to_vmem [thread:$0]  (!%p2859_p1), %s3290_s1, 128, %s444_s11, [#allocation6]  }
  0x8c   : > { %s2420_s22 = scalar_lea.hbm %s2866_s27, 1024  ;;  %p3291_p7 = scmp.ne.s32.totalorder %s3282_s4, 0 }
  0x8d   : > { %p2421_p6 = scmp.ne.s32.totalorder %s2866_s27, %s2420_s22  ;;  %s2425_s5 = scalar_lea.hbm %s3289_s12, 2048 }
  0x8e   : > { %p3292_p10 = pneg %p3291_p7  ;;  %p2426_p11 = scmp.lt.u32.totalorder %s2866_s27, %s3289_s12 }
  0x8f   : > { %p2427_p8 = scmp.lt.u32.totalorder %s2425_s5, %s2420_s22  ;;  %p2429_p3 = scmp.lt.u32.totalorder %s2420_s22, %s2866_s27 }
  0x90   : > { %p2423_p5 = pnand %p2421_p6, %p3292_p10 }
  0x91   : > { %p2428_p0 = por %p2427_p8, %p2426_p11 }
  0x92   : > { %p2424_p9 = pneg %p2423_p5 }
  0x93   : > { %p2430_p4 = por %p2429_p3, %p2428_p0 }
  0x95   : > { %p2431_p12 = pnand %p2430_p4, %p2424_p9 }
  0x97   : > { %2434 = shalt.err (!%p2431_p12)
}
  0x98   : > { %s2435_s11 = scalar_lea.vmem %s2868_s6, 1024  ;;  %p3293_p2 = pmov %p3292_p10 }
  0x99   : > { %p2436_p1 = scmp.ne.s32.totalorder %s2868_s6, %s2435_s11  ;;  %s2555_s10 = smov [#allocation8]  }
  0x9a   : > { %s2440_s28 = sshll.u32 %s2555_s10, 4  ;;  %s2441_s28 = int_to_ptr.vmem [resolvable:$false] %s2440_s28 }
  0x9b   : > { %p2438_p13 = pnand %p2436_p1, %p3293_p2  ;;  %s2442_s0 = scalar_lea.vmem %s2441_s28, 2048 }
  0x9c   : > { %p2443_p10 = scmp.lt.s32.totalorder %s2868_s6, %s2441_s28  ;;  %p2444_p5 = scmp.lt.s32.totalorder %s2442_s0, %s2435_s11 }
  0x9d   : > { %p2439_p6 = pneg %p2438_p13 }
  0x9e   : > { %p2445_p11 = por %p2444_p5, %p2443_p10 }
  0xa0   : > { %p2446_p8 = pnand %p2445_p11, %p2439_p6 }
  0xa2   : > { %2449 = shalt.err (!%p2446_p8)
}
  0xa3   : > { %s3294_s9 = smov 4   ;;  %s3295_s21 = smov 64  }
  0xa4   : > { %2187 = dma.hbm_to_vmem [thread:$0]  (!%p3291_p7), %s2866_s27, 1024, %s2868_s6, %s2756_s7, %s3295_s21, %s3295_s21, %s3294_s9  }
  0xa5   : > { %p3296_p9 = scmp.ne.s32.totalorder %s3287_s16, 0 }
  0xa6   : > { %s3297_s22 = sadd.s32 (!%p3296_p9), 4294967295, %s2548_s23   ;;  %s584_s13 = sand.u32 (!%p3296_p9), 1, %s2524_s17  }
  0xa7   : > { %580 = sbr.rel (%p3296_p9) target bundleno = 3929 (0xf59), region = 76  ;;  %s582_s29 = sand.u32 (!%p3296_p9), 1, %s3297_s22  }
  0xa8   : > { %s2918_s5 = sshll.u32 (!%p3296_p9), %s584_s13, 3  ;;  %s583_s4 = scalar_lea.sflag (!%p3296_p9), [#allocation4], %s582_s29 }
  0xa9   : > { %p3298_p0 = scmp.ne.s32.totalorder (!%p3296_p9), %s3285_s8, 0 }
  0xae   : > { %2495 = dma.done.wait (%p3298_p0), %s583_s4, 128  }
  0xaf   : > { %2497 = vsyncadd (%p3298_p0), %s583_s4, 4294967168  ;;  %p3299_p7 = scmp.ne.s32.totalorder %s3284_s25, 0 }
  0xb1   : > { %2499 = dma.done.wait (%p3299_p7), [#allocation6], 128  }
  0xb2   : > { %2501 = vsyncadd (%p3299_p7), [#allocation6], 4294967168  ;;  %s597_s6 = sand.u32 1, %s2512_s30   ;;  %p3300_p3 = scmp.ne.s32.totalorder %s3286_s24, 0 }
  0xb3   : > { %s1956_s7 = sshll.u32 %s597_s6, 4 }
  0xb4   : > { %s2930_s27 = scalar_lea.vmem [#allocation7], %s1956_s7 }
  0xb5   : > { %2503 = dma.done.wait (%p3300_p3), %s583_s4, 1280  }
  0xb6   : > { %2505 = vsyncadd (%p3300_p3), %s583_s4, 4294966016  ;;  %s1957_s8 = sshll.u32 %s597_s6, 6  ;;  %p696_p4 = scmp.lt.s32.totalorder %s2532_s19, 1 }
  0xb7   : > { %p730_p12 = scmp.lt.s32.totalorder %s2536_s20, 1  ;;  %s3302_s6 = sld [smem:[#allocation25_spill]] }
  0xb8   : > { %s2939_s25 = scalar_select %p696_p4, %s2532_s19, 1 }
  0xb9   : > { %s3340_s20 = smov (!%p730_p12, %s2536_s20), 1  ;;  %s3305_s28 = sld [smem:[#allocation30_spill]] }
  0xba   : > { %s2003_s0 = sshll.u32 %s2939_s25, 4  ;;  %s3306_s21 = sld [smem:[#allocation31_spill]] }
  0xbb   : > { %s3308_s12 = sld [smem:[#allocation34_spill]]  ;;  %s1962_s18 = sshll.u32 %s3340_s20, 3 }
  0xbc   : > { %s3309_s16 = sld [smem:[#allocation35_spill]]  ;;  %p1963_p1 = scmp.ne.s32.totalorder %s2532_s19, 0 }
  0xbd   : > { %s2958_s7 = scalar_lea.vmem %s3302_s6, %s2003_s0  ;;  %s3307_s6 = sld [smem:[#allocation32_spill]]  ;;  %v740_v1 = vld [vmem:[#allocation5] sm:$0xff] (!%p1963_p1)  ;;  %vm742_vm0 = vcmask (!%p1963_p1), 261120  }
  0xbe   : > { %738 = sbr.rel (%p1963_p1) target bundleno = 197 (0xc5), region = 96  ;;  %s3310_s30 = scalar_lea.vmem (!%p1963_p1), [#allocation3], %s2918_s5 }
  0xbf   : > { %s718_s15 = scalar_lea.vmem %s3305_s28, %s2939_s25  ;;  %s2990_s28 = scalar_lea.vmem [#allocation8], %s1957_s8  ;;  %v739_v0 = vld [vmem:[%s3310_s30] sm:$0xff] (!%p1963_p1) }
  0xc0   : > { %s2975_s22 = scalar_lea.vmem %s3306_s21, %s2003_s0  ;;  %v741_v2 = vadd.f32 (!%p1963_p1), %v740_v1, %v739_v0 }
  0xc1   : > { %s729_s14 = scalar_lea.vmem %s3308_s12, %s2939_s25 }
  0xc2   : > { %s2988_s17 = scalar_lea.vmem %s3309_s16, %s1962_s18 }
  0xc3   : > { %s726_s29 = scalar_lea.vmem %s3307_s6, %s2939_s25  ;;  %743 = vst.msk [vmem:[%s2988_s17] sm:$0xff] (!%p1963_p1), %vm742_vm0, %v741_v2 }
  0xc5 PF: > { %vm747_vm1 = vcmask 261120   ;;  %v2296_v7 = vld [vmem:[%s2958_s7] sm:$0xff]   ;;  %v2556_v8 = vmov 0.0   ;;  %vm2557_vm2 = vmmov 0   ;;  %v2297_v9 = vld [vmem:[%s2958_s7 + $0x8] sm:$0xff]   ;;  %s3311_s20 = scalar_lea.vmem %s3221_s2, %s2939_s25  ;;  %s3312_s8 = scalar_lea.vmem %s3222_s3, %s2939_s25  ;;  %vm859_vm3 = vcmask 64512  }
  0xc6   : > { %2044 = vmatprep.subr.bf16.mxu1 %v2556_v8  ;;  %2048 = vmatprep.mubr.msk.bf16.mxu1 %vm2557_vm2, %v2556_v8  ;;  %v1964_v19 = vld [vmem:[%s3311_s20] ss:$0 sm:$0xff]  ;;  %s3313_s11 = sld [smem:[#allocation26_spill]]  ;;  %s2558_s9 = smov 64   ;;  %vm923_vm4 = vcmask 1043456   ;;  %v845_v36 = vlaneseq }
  0xc7   : > { %2045 = vmatpush3.bf16.msra.mxu1 %v2296_v7  ;;  %2070 = vmatprep.subr.bf16.mxu0 %v2556_v8  ;;  %v1965_v21 = vld [vmem:[%s3312_s8] ss:$0 sm:$0xff]  ;;  %s2559_s21 = smov 96   ;;  %v2560_v39 = vmov -1e+30   ;;  %s2561_s13 = smov 88  }
  0xc8   : > { %2046 = vmatprep.subr.bf16.mxu1 %v2556_v8  ;;  %2072 = vmatprep.mubr.msk.bf16.mxu0 %vm2557_vm2, %v2556_v8  ;;  %v846_v37 = vshrl.u32 %v845_v36, 7  ;;  %v848_v38 = vand.u32 127, %v845_v36  ;;  %s2562_s4 = smov 120   ;;  %s2563_s6 = smov 56  }
  0xc9   : > { %s2564_s1 = smov 80   ;;  %s2565_s12 = smov 112  }
  0xca   : > { %v2997_v3 = vld [vmem:[%s2988_s17] sm:$0xff]  ;;  %vm849_vm5 = vcmp.le.s32.totalorder %v848_v38, %v846_v37  ;;  %s2566_s24 = smov 48   ;;  %s2567_s26 = smov 72  }
  0xcb   : > { %v748_v4 = vsel %vm747_vm1, %v2997_v3, 0.0  ;;  %v753_v5 = vmul.f32 %v2997_v3, %v2997_v3  ;;  %2047 = vmatpush3.bf16.msra.mxu1 %v2297_v9  ;;  %v3045_v40 = vsel %vm849_vm5, 0.0, %v2560_v39  ;;  %s2568_s16 = smov 104   ;;  %s2569_s30 = smov 40  }
  0xcc   : > { %749 = vadd.xlane.f32.xlu0 %v748_v4  ;;  %2052 = vmatprep.subr.bf16.mxu1 %v2556_v8  ;;  %s3314_s10 = scalar_lea.vmem %s3313_s11, %s2939_s25  ;;  %s3315_s19 = sld [smem:[#allocation28_spill]] }
  0xcd   : > { %v754_v6 = vsel %vm747_vm1, %v753_v5, 0.0  ;;  %v1966_v25 = vld [vmem:[%s3314_s10] ss:$0 sm:$0xff]  ;;  %s3317_s5 = sld [smem:[#allocation29_spill]] }
  0xd0   : > { %755 = vadd.xlane.f32.xlu0 %v754_v6 }
  0xd2   : > { %s3316_s20 = scalar_lea.vmem %s3315_s19, %s2939_s25 }
  0xd3   : > { %s3318_s8 = scalar_lea.vmem %s3317_s5, %s2939_s25 }
 0x159   : > { %v750_v10 = vpop.xlane.xlu0 %749 }
 0x15a   : > { %v752_v11 = vmul.f32 0.03125, %v750_v10 }
 0x15c   : > { %v758_v13 = vmul.f32 %v752_v11, %v752_v11  ;;  %v760_v17 = vsub.f32 %v2997_v3, %v752_v11 }
 0x15d   : > { %v756_v12 = vpop.xlane.xlu0 %755 }
 0x15e   : > { %v757_v14 = vmul.f32 0.03125, %v756_v12 }
 0x160   : > { %v759_v15 = vsub.f32 %v757_v14, %v758_v13 }
 0x162   : > { %v761_v16 = vadd.f32 1e-05, %v759_v15 }
 0x164   : > { %2308 = vrsqrt.f32 %v761_v16 }
 0x16e   : > { %v2309_v18 = vpop.eup %2308 }
 0x16f   : > { %v763_v20 = vmul.f32 %v2309_v18, %v760_v17 }
 0x171   : > { %v770_v22 = vmul.f32 %v1964_v19, %v763_v20 }
 0x173   : > { %v777_v23 = vadd.f32 %v1965_v21, %v770_v22 }
 0x175   : > { %v778_v24 = vpack.c.bf16 %v777_v23, %v777_v23  ;;  %v852_v23 = vld [vmem:[%s2930_s27 + $0x4] sm:$0xf] }
 0x177   : > { %2049 = vmatmul.mubr.msk.bf16.vlgmr.msra.gmra.mrb[0].mxu1 %vm747_vm1, %v778_v24  ;;  %v1083_v24 = vsel %vm923_vm4, %v852_v23, 0 }
 0x178   : > { %2054 = vmatprep.mubr.msk.bf16.mxu1 %vm2557_vm2, %v2556_v8 }
 0x24a   : > { %v839_v26 = vpop.f32.mrb[0].mxu1 }
 0x24b   : > { %v840_v27 = vadd.f32 %v1966_v25, %v839_v26  ;;  %v2050_v28 = vpop.f32.mrb[1].mxu1  ;;  %v851_v25 = vld [vmem:[%s2930_s27] sm:$0xf] }
 0x24c   : > { %v842_v29 = vpop.f32.mrb[2].mxu1 }
 0x24d   : > { %v3033_v30 = vpack.c.bf16 %v840_v27, %v840_v27  ;;  %v2051_v31 = vpop.f32.mrb[3].mxu1  ;;  %v1129_v29 = vsel %vm923_vm4, %v851_v25, 0  ;;  %v1982_v25 = vld [vmem:[%s3316_s20] ss:$0 sm:$0xff] }
 0x24f   : > { %918 = vrot.lane.b32.xlu0 %v3033_v30, %s2558_s9  ;;  %857 = vrot.lane.b32.xlu1 %v3033_v30, %s2559_s21 }
 0x2c1   : > { %v858_v32 = vpop.permute.xlu1 %857  ;;  %v919_v34 = vpop.permute.xlu0 %918 }
 0x2c2   : > { %v864_v33 = vsel %vm859_vm3, %v858_v32, 0  ;;  %v925_v35 = vsel %vm923_vm4, %v919_v34, 0 }
 0x2c3   : > { %2053 = vmatpush3.bf16.xpose.msra.mxu1 %v864_v33 }
 0x2c4   : > { %2058 = vmatprep.subr.bf16.mxu1 %v2556_v8 }
 0x2ca   : > { %2055 = vmatmul.mubr.msk.bf16.vlgmr.msra.gmra.mrb[4].mxu1 %vm859_vm3, %v3033_v30 }
 0x2cb   : > { %2059 = vmatpush3.bf16.msra.mxu1 %v925_v35  ;;  %2060 = vmatprep.mubr.msk.bf16.mxu1 %vm2557_vm2, %v2556_v8 }
 0x2cc   : > { %2064 = vmatprep.subr.bf16.mxu1 %v2556_v8 }
 0x39d   : > { %v900_v41 = vpop.f32.mrb[4].mxu1 }
 0x39e   : > { %v901_v42 = vadd.f32 %v900_v41, %v3045_v40  ;;  %v2056_v43 = vpop.f32.mrb[5].mxu1 }
 0x39f   : > { %v903_v44 = vpop.f32.mrb[6].mxu1 }
 0x3a0   : > { %v2057_v45 = vpop.f32.mrb[7].mxu1  ;;  %v906_v46 = vsel %vm859_vm3, %v901_v42, -inf }
 0x3a1   : > { %907 = vmax.xlane.f32.xlu1 %v906_v46 }
 0x42e   : > { %v908_v47 = vpop.xlane.xlu1 %907 }
 0x42f   : > { %v909_v48 = vsub.f32 %v901_v42, %v908_v47 }
 0x431   : > { %v910_v49 = vmul.f32 1.442695, %v909_v48 }
 0x433   : > { %2310 = vpow2.f32 %v910_v49 }
 0x43d   : > { %v2311_v50 = vpop.eup %2310 }
 0x43e   : > { %v912_v51 = vsel %vm859_vm3, %v2311_v50, 0.0 }
 0x43f   : > { %913 = vadd.xlane.f32.xlu0 %v912_v51 }
 0x455   : > { %970 = vrot.lane.b32.xlu0 %v3033_v30, %s2561_s13 }
 0x459   : > { %968 = vrot.lane.b32.xlu0 %v3033_v30, %s2562_s4 }
 0x4cc   : > { %v914_v52 = vpop.xlane.xlu0 %913 }
 0x4cd   : > { %2312 = vrcp.f32 %v914_v52 }
 0x4d0   : > { %v971_v55 = vpop.permute.xlu0 %970 }
 0x4d1   : > { %v976_v57 = vsel %vm859_vm3, %v971_v55, 0 }
 0x4d4   : > { %v969_v58 = vpop.permute.xlu0 %968 }
 0x4d7   : > { %v2313_v53 = vpop.eup %2312 }
 0x4d8   : > { %v916_v54 = vmul.f32 %v2313_v53, %v2311_v50  ;;  %v853_v53 = vld [vmem:[%s2930_s27 + $0x8] sm:$0xf] }
 0x4da   : > { %v917_v56 = vpack.c.bf16 %v916_v54, %v916_v54  ;;  %v1286_v54 = vsel %vm923_vm4, %v853_v53, 0  ;;  %v2304_v53 = vld [vmem:[%s2990_s28 + $0x20] sm:$0xff]  }
 0x4dc   : > { %2061 = vmatmul.mubr.msk.bf16.vlgmr.msra.gmra.mrb[8].mxu1 %vm859_vm3, %v917_v56 }
 0x4dd   : > { %2065 = vmatpush3.bf16.xpose.msra.mxu1 %v976_v57  ;;  %2066 = vmatprep.mubr.msk.bf16.mxu1 %vm2557_vm2, %v2556_v8 }
 0x4de   : > { %2076 = vmatprep.subr.bf16.mxu1 %v2556_v8 }
 0x4e4   : > { %2067 = vmatmul.mubr.msk.bf16.vlgmr.msra.gmra.mrb[12].mxu1 %vm859_vm3, %v969_v58 }
 0x4e5   : > { %2078 = vmatprep.mubr.msk.bf16.mxu1 %vm2557_vm2, %v2556_v8  ;;  %2077 = vmatpush3.bf16.msra.mxu1 %v1083_v24 }
 0x4e6   : > { %2082 = vmatprep.subr.bf16.mxu1 %v2556_v8 }
 0x5af   : > { %v3060_v59 = vpop.f32.mrb[8].mxu1 }
 0x5b0   : > { %v2062_v60 = vpop.f32.mrb[9].mxu1  ;;  %v967_v39 = vpack.c.bf16 %v3060_v59, %v3060_v59 }
 0x5b1   : > { %v964_v61 = vpop.f32.mrb[10].mxu1 }
 0x5b2   : > { %v2063_v62 = vpop.f32.mrb[11].mxu1 }
 0x5b7   : > { %v1012_v63 = vpop.f32.mrb[12].mxu1 }
 0x5b8   : > { %v1013_v0 = vadd.f32 %v1012_v63, %v3045_v40  ;;  %v2068_v1 = vpop.f32.mrb[13].mxu1 }
 0x5b9   : > { %v1015_v2 = vpop.f32.mrb[14].mxu1 }
 0x5ba   : > { %v2069_v4 = vpop.f32.mrb[15].mxu1  ;;  %v1018_v5 = vsel %vm859_vm3, %v1013_v0, -inf }
 0x5bb   : > { %1019 = vmax.xlane.f32.xlu1 %v1018_v5 }
 0x5cc   : > { %1030 = vrot.lane.b32.xlu1 %v3033_v30, %s2563_s6 }
 0x5d0   : > { %1173 = vrot.lane.b32.xlu1 %v3033_v30, %s2564_s1 }
 0x5d4   : > { %1171 = vrot.lane.b32.xlu1 %v3033_v30, %s2565_s12 }
 0x648   : > { %v1020_v6 = vpop.xlane.xlu1 %1019 }
 0x649   : > { %v1021_v7 = vsub.f32 %v1013_v0, %v1020_v6 }
 0x64b   : > { %v1022_v9 = vmul.f32 1.442695, %v1021_v7 }
 0x64c   : > { %v1031_v10 = vpop.permute.xlu1 %1030 }
 0x64d   : > { %2314 = vpow2.f32 %v1022_v9  ;;  %v1036_v11 = vsel %vm923_vm4, %v1031_v10, 0 }
 0x64e   : > { %2071 = vmatpush3.bf16.msra.mxu0 %v1036_v11 }
 0x64f   : > { %2088 = vmatprep.subr.bf16.mxu0 %v2556_v8 }
 0x650   : > { %v1174_v17 = vpop.permute.xlu1 %1173 }
 0x651   : > { %v1179_v19 = vsel %vm859_vm3, %v1174_v17, 0 }
 0x654   : > { %v1172_v21 = vpop.permute.xlu1 %1171 }
 0x657   : > { %v2315_v12 = vpop.eup %2314 }
 0x658   : > { %v1024_v13 = vsel %vm859_vm3, %v2315_v12, 0.0 }
 0x659   : > { %1025 = vadd.xlane.f32.xlu0 %v1024_v13 }
 0x66f   : > { %1233 = vrot.lane.b32.xlu0 %v3033_v30, %s2566_s24 }
 0x6e6   : > { %v1026_v14 = vpop.xlane.xlu0 %1025 }
 0x6e7   : > { %2316 = vrcp.f32 %v1026_v14 }
 0x6ea   : > { %v1234_v20 = vpop.permute.xlu0 %1233 }
 0x6eb   : > { %v1239_v22 = vsel %vm923_vm4, %v1234_v20, 0 }
 0x6f1   : > { %v2317_v15 = vpop.eup %2316 }
 0x6f2   : > { %v1028_v16 = vmul.f32 %v2317_v15, %v2315_v12  ;;  %v854_v12 = vld [vmem:[%s2930_s27 + $0xc] sm:$0xf] }
 0x6f3   : > { %v1444_v14 = vsel %vm923_vm4, %v854_v12, 0 }
 0x6f4   : > { %v1029_v18 = vpack.c.bf16 %v1028_v16, %v1028_v16 }
 0x6f6   : > { %2073 = vmatmul.mubr.msk.bf16.vlgmr.msra.gmra.mrb[0].mxu0 %vm859_vm3, %v1029_v18 }
 0x6f7   : > { %2089 = vmatpush3.bf16.xpose.msra.mxu0 %v1179_v19  ;;  %2090 = vmatprep.mubr.msk.bf16.mxu0 %vm2557_vm2, %v2556_v8 }
 0x6f8   : > { %2094 = vmatprep.subr.bf16.mxu0 %v2556_v8 }
 0x6fe   : > { %2091 = vmatmul.mubr.msk.bf16.vlgmr.msra.gmra.mrb[4].mxu0 %vm859_vm3, %v1172_v21 }
 0x6ff   : > { %2095 = vmatpush3.bf16.msra.mxu0 %v1239_v22  ;;  %2096 = vmatprep.mubr.msk.bf16.mxu0 %vm2557_vm2, %v2556_v8 }
 0x700   : > { %2106 = vmatprep.subr.bf16.mxu0 %v2556_v8 }
 0x7c9   : > { %v1072_v26 = vpop.f32.mrb[0].mxu0 }
 0x7ca   : > { %v1078_v27 = vpack.c.bf16 %v1072_v26, %v1072_v26  ;;  %v2074_v28 = vpop.f32.mrb[1].mxu0 }
 0x7cb   : > { %v1075_v31 = vpop.f32.mrb[2].mxu0 }
 0x7cc   : > { %v2075_v32 = vpop.f32.mrb[3].mxu0  ;;  %2079 = vmatmul.mubr.msk.bf16.vlgmr.msra.gmra.mrb[16].mxu1 %vm859_vm3, %v1078_v27 }
 0x7cd   : > { %2083 = vmatpush3.bf16.msra.mxu1 %v1129_v29  ;;  %2084 = vmatprep.mubr.msk.bf16.mxu1 %vm2557_vm2, %v2556_v8  ;;  %v2298_v32 = vld [vmem:[%s2975_s22] sm:$0xff]  }
 0x7ce   : > { %2100 = vmatprep.subr.bf16.mxu1 %v2556_v8 }
 0x7d1   : > { %v1215_v33 = vpop.f32.mrb[4].mxu0 }
 0x7d2   : > { %v1216_v34 = vadd.f32 %v1215_v33, %v3045_v40  ;;  %v2092_v35 = vpop.f32.mrb[5].mxu0  ;;  %v2299_v33 = vld [vmem:[%s2975_s22 + $0x8] sm:$0xff]  }
 0x7d3   : > { %v1218_v36 = vpop.f32.mrb[6].mxu0 }
 0x7d4   : > { %v2093_v37 = vpop.f32.mrb[7].mxu0  ;;  %v1221_v38 = vsel %vm859_vm3, %v1216_v34, -inf }
 0x7d5   : > { %1222 = vmax.xlane.f32.xlu1 %v1221_v38 }
 0x7d8   : > { %2085 = vmatmul.mubr.msk.bf16.vlgmr.msra.gmra.mrb[16].mxu1 %vm859_vm3, %v967_v39 }
 0x7d9   : > { %2102 = vmatprep.mubr.msk.bf16.mxu1 %vm2557_vm2, %v2556_v8  ;;  %2101 = vmatpush3.bf16.msra.mxu1 %v1286_v54  ;;  %v2305_v54 = vld [vmem:[%s2990_s28 + $0x28] sm:$0xff]  }
 0x7da   : > { %2112 = vmatprep.subr.bf16.mxu1 %v2556_v8 }
 0x862   : > { %v1223_v41 = vpop.xlane.xlu1 %1222 }
 0x863   : > { %v1224_v42 = vsub.f32 %v1216_v34, %v1223_v41 }
 0x865   : > { %v1225_v43 = vmul.f32 1.442695, %v1224_v42 }
 0x867   : > { %2318 = vpow2.f32 %v1225_v43  ;;  %v1983_v43 = vld [vmem:[%s3318_s8] ss:$0 sm:$0xff] }
 0x871   : > { %v2319_v44 = vpop.eup %2318 }
 0x872   : > { %v1227_v45 = vsel %vm859_vm3, %v2319_v44, 0.0 }
 0x873   : > { %1228 = vadd.xlane.f32.xlu0 %v1227_v45  ;;  %v1984_v45 = vld [vmem:[%s718_s15] ss:$0 sm:$0xff] }
 0x889   : > { %1331 = vrot.lane.b32.xlu0 %v3033_v30, %s2567_s26 }
 0x88d   : > { %1329 = vrot.lane.b32.xlu0 %v3033_v30, %s2568_s16 }
 0x900   : > { %v1229_v46 = vpop.xlane.xlu0 %1228 }
 0x901   : > { %2320 = vrcp.f32 %v1229_v46 }
 0x904   : > { %v1332_v49 = vpop.permute.xlu0 %1331 }
 0x905   : > { %v1337_v51 = vsel %vm859_vm3, %v1332_v49, 0  ;;  %v2300_v49 = vld [vmem:[%s2990_s28] sm:$0xff]  }
 0x908   : > { %v1330_v52 = vpop.permute.xlu0 %1329 }
 0x90b   : > { %v2321_v47 = vpop.eup %2320 }
 0x90c   : > { %v1231_v48 = vmul.f32 %v2321_v47, %v2319_v44 }
 0x90e   : > { %v1232_v50 = vpack.c.bf16 %v1231_v48, %v1231_v48 }
 0x910   : > { %2097 = vmatmul.mubr.msk.bf16.vlgmr.msra.gmra.mrb[8].mxu0 %vm859_vm3, %v1232_v50  ;;  %v2301_v50 = vld [vmem:[%s2990_s28 + $0x8] sm:$0xff]  }
 0x911   : > { %2107 = vmatpush3.bf16.xpose.msra.mxu0 %v1337_v51  ;;  %2108 = vmatprep.mubr.msk.bf16.mxu0 %vm2557_vm2, %v2556_v8  ;;  %v2302_v51 = vld [vmem:[%s2990_s28 + $0x10] sm:$0xff]  }
 0x912   : > { %2124 = vmatprep.subr.bf16.mxu0 %v2556_v8 }
 0x918   : > { %2109 = vmatmul.mubr.msk.bf16.vlgmr.msra.gmra.mrb[12].mxu0 %vm859_vm3, %v1330_v52  ;;  %v2303_v52 = vld [vmem:[%s2990_s28 + $0x18] sm:$0xff]  }
 0x919   : > { %2128 = vmatprep.mubr.msk.bf16.mxu0 %vm2557_vm2, %v2556_v8  ;;  %2125 = vmatpush3.bf16.msra.mxu0 %v2298_v32 }
 0x91a   : > { %2126 = vmatprep.subr.bf16.mxu0 %v2556_v8 }
 0x91d   : > { %2127 = vmatpush3.bf16.msra.mxu0 %v2299_v33 }
 0x91e   : > { %2132 = vmatprep.subr.bf16.mxu0 %v2556_v8 }
 0x9e3   : > { %v1275_v55 = vpop.f32.mrb[8].mxu0 }
 0x9e4   : > { %v1281_v56 = vpack.c.bf16 %v1275_v55, %v1275_v55  ;;  %v2098_v57 = vpop.f32.mrb[9].mxu0  ;;  %v2306_v55 = vld [vmem:[%s2990_s28 + $0x30] sm:$0xff]  }
 0x9e5   : > { %v1278_v58 = vpop.f32.mrb[10].mxu0  ;;  %v1985_v57 = vld [vmem:[%s726_s29] ss:$0 sm:$0xff] }
 0x9e6   : > { %v2099_v59 = vpop.f32.mrb[11].mxu0  ;;  %2103 = vmatmul.mubr.msk.bf16.vlgmr.msra.gmra.mrb[16].mxu1 %vm859_vm3, %v1281_v56  ;;  %v2307_v56 = vld [vmem:[%s2990_s28 + $0x38] sm:$0xff]  }
 0x9e7   : > { %2114 = vmatprep.mubr.msk.bf16.mxu1 %vm2557_vm2, %v2556_v8 }
 0x9eb   : > { %v1373_v60 = vpop.f32.mrb[12].mxu0 }
 0x9ec   : > { %v1374_v61 = vadd.f32 %v1373_v60, %v3045_v40  ;;  %v2110_v62 = vpop.f32.mrb[13].mxu0 }
 0x9ed   : > { %v1376_v63 = vpop.f32.mrb[14].mxu0 }
 0x9ee   : > { %v2111_v0 = vpop.f32.mrb[15].mxu0  ;;  %v1379_v1 = vsel %vm859_vm3, %v1374_v61, -inf }
 0x9ef   : > { %1380 = vmax.xlane.f32.xlu1 %v1379_v1 }
 0xa00   : > { %1391 = vrot.lane.b32.xlu1 %v3033_v30, %s2569_s30 }
 0xa7c   : > { %v1381_v2 = vpop.xlane.xlu1 %1380 }
 0xa7d   : > { %v1382_v4 = vsub.f32 %v1374_v61, %v1381_v2 }
 0xa7f   : > { %v1383_v5 = vmul.f32 1.442695, %v1382_v4 }
 0xa80   : > { %v1392_v6 = vpop.permute.xlu1 %1391 }
 0xa81   : > { %2322 = vpow2.f32 %v1383_v5  ;;  %v1397_v7 = vsel %vm923_vm4, %v1392_v6, 0  ;;  %v1990_v6 = vld [vmem:[%s729_s14] ss:$0 sm:$0xff] }
 0xa82   : > { %2113 = vmatpush3.bf16.msra.mxu1 %v1397_v7 }
 0xa83   : > { %2118 = vmatprep.subr.bf16.mxu1 %v2556_v8 }
 0xa8b   : > { %v2323_v40 = vpop.eup %2322 }
 0xa8c   : > { %v1385_v9 = vsel %vm859_vm3, %v2323_v40, 0.0 }
 0xa8d   : > { %1386 = vadd.xlane.f32.xlu0 %v1385_v9 }
 0xb1a   : > { %v1387_v10 = vpop.xlane.xlu0 %1386 }
 0xb1b   : > { %2324 = vrcp.f32 %v1387_v10 }
 0xb25   : > { %v2325_v11 = vpop.eup %2324 }
 0xb26   : > { %v1389_v13 = vmul.f32 %v2325_v11, %v2323_v40 }
 0xb28   : > { %v1390_v30 = vpack.c.bf16 %v1389_v13, %v1389_v13 }
 0xb2a   : > { %2115 = vmatmul.mubr.msk.bf16.vlgmr.msra.gmra.mrb[20].mxu1 %vm859_vm3, %v1390_v30 }
 0xb2b   : > { %2119 = vmatpush3.bf16.msra.mxu1 %v1444_v14  ;;  %2120 = vmatprep.mubr.msk.bf16.mxu1 %vm2557_vm2, %v2556_v8 }
 0xbfd   : > { %v1433_v15 = vpop.f32.mrb[20].mxu1 }
 0xbfe   : > { %v1439_v16 = vpack.c.bf16 %v1433_v15, %v1433_v15  ;;  %v2116_v17 = vpop.f32.mrb[21].mxu1 }
 0xbff   : > { %v1436_v18 = vpop.f32.mrb[22].mxu1 }
 0xc00   : > { %v2117_v19 = vpop.f32.mrb[23].mxu1  ;;  %2121 = vmatmul.mubr.msk.bf16.vlgmr.msra.gmra.mrb[16].mxu1 %vm859_vm3, %v1439_v16 }
 0xcd3   : > { %v1480_v20 = vpop.f32.mrb[16].mxu1 }
 0xcd4   : > { %1487 = vst.msk [vmem:[#allocation2] sm:$0xff] %vm747_vm1, %v1480_v20  ;;  %v2122_v21 = vpop.f32.mrb[17].mxu1 }
 0xcd5   : > { %v1483_v22 = vpop.f32.mrb[18].mxu1 }
 0xcd6   : > { %v2123_v23 = vpop.f32.mrb[19].mxu1 }
 0xcdb   : > { %v1488_v24 = vld [vmem:[#allocation2] sm:$0xff] }
 0xcdc   : > { %v1489_v26 = vadd.f32 %v1488_v24, %v2997_v3 }
 0xcde   : > { %v3133_v27 = vadd.f32 %v1982_v25, %v1489_v26 }
 0xce0   : > { %v1500_v28 = vsel %vm747_vm1, %v3133_v27, 0.0  ;;  %v1504_v29 = vmul.f32 %v3133_v27, %v3133_v27 }
 0xce1   : > { %1501 = vadd.xlane.f32.xlu1 %v1500_v28 }
 0xce2   : > { %v1505_v31 = vsel %vm747_vm1, %v1504_v29, 0.0 }
 0xce3   : > { %1506 = vadd.xlane.f32.xlu0 %v1505_v31 }
 0xd6e   : > { %v1502_v3 = vpop.xlane.xlu1 %1501 }
 0xd6f   : > { %v1503_v34 = vmul.f32 0.03125, %v1502_v3 }
 0xd70   : > { %v1507_v35 = vpop.xlane.xlu0 %1506 }
 0xd71   : > { %v1509_v36 = vmul.f32 %v1503_v34, %v1503_v34  ;;  %v1508_v37 = vmul.f32 0.03125, %v1507_v35  ;;  %v1511_v41 = vsub.f32 %v3133_v27, %v1503_v34 }
 0xd73   : > { %v1510_v38 = vsub.f32 %v1508_v37, %v1509_v36 }
 0xd75   : > { %v1512_v39 = vadd.f32 1e-05, %v1510_v38 }
 0xd77   : > { %2326 = vrsqrt.f32 %v1512_v39 }
 0xd81   : > { %v2327_v42 = vpop.eup %2326 }
 0xd82   : > { %v1514_v44 = vmul.f32 %v2327_v42, %v1511_v41 }
 0xd84   : > { %v1521_v46 = vmul.f32 %v1983_v43, %v1514_v44 }
 0xd86   : > { %v1528_v47 = vadd.f32 %v1984_v45, %v1521_v46 }
 0xd88   : > { %v1529_v48 = vpack.c.bf16 %v1528_v47, %v1528_v47 }
 0xd8a   : > { %2129 = vmatmul.mubr.msk.bf16.vlgmr.msra.gmra.mrb[16].mxu0 %vm747_vm1, %v1529_v48 }
 0xd8b   : > { %2148 = vmatprep.mubr.msk.bf16.mxu0 %vm2557_vm2, %v2556_v8  ;;  %2133 = vmatpush3.bf16.msra.mxu0 %v2300_v49 }
 0xd8c   : > { %2134 = vmatprep.subr.bf16.mxu0 %v2556_v8 }
 0xd8f   : > { %2135 = vmatpush3.bf16.msra.mxu0 %v2301_v50 }
 0xd90   : > { %2136 = vmatprep.subr.bf16.mxu0 %v2556_v8 }
 0xd93   : > { %2137 = vmatpush3.bf16.msra.mxu0 %v2302_v51 }
 0xd94   : > { %2138 = vmatprep.subr.bf16.mxu0 %v2556_v8 }
 0xd97   : > { %2139 = vmatpush3.bf16.msra.mxu0 %v2303_v52 }
 0xd98   : > { %2140 = vmatprep.subr.bf16.mxu0 %v2556_v8 }
 0xd9b   : > { %2141 = vmatpush3.bf16.msra.mxu0 %v2304_v53 }
 0xd9c   : > { %2142 = vmatprep.subr.bf16.mxu0 %v2556_v8 }
 0xd9f   : > { %2143 = vmatpush3.bf16.msra.mxu0 %v2305_v54 }
 0xda0   : > { %2144 = vmatprep.subr.bf16.mxu0 %v2556_v8 }
 0xda3   : > { %2145 = vmatpush3.bf16.msra.mxu0 %v2306_v55 }
 0xda4   : > { %2146 = vmatprep.subr.bf16.mxu0 %v2556_v8 }
 0xda7   : > { %2147 = vmatpush3.bf16.msra.mxu0 %v2307_v56 }
 0xe5d   : > { %v1590_v58 = vpop.f32.mrb[16].mxu0 }
 0xe5e   : > { %v1591_v59 = vadd.f32 %v1985_v57, %v1590_v58  ;;  %v2130_v60 = vpop.f32.mrb[17].mxu0 }
 0xe5f   : > { %v1593_v61 = vpop.f32.mrb[18].mxu0 }
 0xe60   : > { %v1989_v62 = vmul.f32 -1.702, %v1591_v59  ;;  %v2131_v63 = vpop.f32.mrb[19].mxu0 }
 0xe62   : > { %v1598_v0 = vmul.f32 1.442695, %v1989_v62 }
 0xe64   : > { %2328 = vpow2.f32 %v1598_v0 }
 0xe6e   : > { %v2329_v1 = vpop.eup %2328 }
 0xe6f   : > { %v1600_v2 = vadd.f32 1.0, %v2329_v1 }
 0xe71   : > { %2330 = vrcp.f32 %v1600_v2 }
 0xe7b   : > { %v2331_v8 = vpop.eup %2330 }
 0xe7c   : > { %v1603_v4 = vmul.f32 %v2331_v8, %v1591_v59 }
 0xe7e   : > { %v1604_v5 = vpack.c.bf16 %v1603_v4, %v1603_v4 }
 0xe80   : > { %2149 = vmatmul.mubr.bf16.vlgmr.msra.gmra.mrb[20].mxu0 %v1604_v5 }
 0xf53   : > { %v1710_v7 = vpop.f32.mrb[20].mxu0 }
 0xf54   : > { %v1711_v40 = vadd.f32 %v1990_v6, %v1710_v7  ;;  %v2150_v9 = vpop.f32.mrb[21].mxu0 }
 0xf55   : > { %v1713_v10 = vpop.f32.mrb[22].mxu0 }
 0xf56   : > { %v1716_v11 = vadd.f32 %v1711_v40, %v3133_v27  ;;  %v2151_v12 = vpop.f32.mrb[23].mxu0 }
 0xf58   : > { %1717 = vst.msk [vmem:[%s2988_s17] sm:$0xff] %vm747_vm1, %v1716_v11 }
 0xf59 PF: > { %s3322_s13 = sld [smem:[#allocation18_spill]]  ;;  %s3323_s29 = sld [smem:[#allocation12_spill]] }
 0xf5a   : > { %s3324_s30 = sld [smem:[#allocation13_spill]]  ;;  %s3326_s16 = sld [smem:[#allocation14_spill]] }
 0xf5b   : > { %s3325_s15 = sld [smem:[#allocation21_spill]]  ;;  %s3327_s17 = sld [smem:[#allocation15_spill]] }
 0xf5c   : > { %s3328_s18 = sld [smem:[#allocation22_spill]]  ;;  %s3329_s19 = sld [smem:[#allocation16_spill]] }
 0xf5d   : > { %s3330_s20 = sld [smem:[#allocation17_spill]]  ;;  %s3331_s21 = sld [smem:[#allocation19_spill]] }
 0xf5e   : > { %s3332_s22 = sld [smem:[#allocation20_spill]] }
 0xf5f   : > { %s28_s23 = sadd.s32 1, %s3322_s13  }
 0xf60   : > { %p25_p2 = scmp.ge.s32.totalorder %s28_s23, 6  }
 0xf62   :  { %27 = sbr.rel (!%p25_p2) target bundleno = 22 (0x16), region = 176 }
 0xf69   :  { %1737 = vsyncpa [#allocation4], 1 }
 0xf6a   :  { %1739 = vsyncpa [#allocation4 + $0x1], 1 }
 0xf6b   :  { %1740 = vsyncpa [#allocation6], 1 }

</bundles_post_ra>
